<compile_context>
chip_gen: v7x
topology: tpu7x:2x2x1
jax: 0.10.0
libtpu: 0.0.40
codegen_flags: <defaults>
</compile_context>

<pallas_src>
import functools

import jax
import jax.numpy as jnp
from jax.experimental import pallas as pl
from jax.experimental.pallas import tpu as pltpu


def _round_up(x, m):
    return (x + m - 1) // m * m


def _pick_tile_h(H, Wp, Cp, NCp, budget_bytes=24 * 1024 * 1024):
    """Largest divisor of H whose per-tile VMEM footprint fits the budget."""
    W = Wp - 2
    per_row = (2 * Wp * Cp * 2      # input rows (bf16), double-buffered
               + 2 * W * NCp * 4    # output rows (f32), double-buffered
               + W * Cp * 4         # f32 accumulator
               + 3 * W * Cp * 2)    # 3 kw-shifted bf16 slices
    max_th = max(1, budget_bytes // per_row)
    best = 1
    for d in range(1, H + 1):
        if H % d == 0 and d <= max_th:
            best = d
    return best


def _out_conv_kernel(xp_ref, w1_ref, shift_ref, w2_ref, out_ref,
                     *, TH, W, Cp, NCp):
    # xp_ref:    (1, TH+2, W+2, Cp)  bf16  zero-padded input rows (incl. halo)
    # w1_ref:    (9, Cp, Cp)         bf16  3x3 weights, tap-major, BN scale folded
    # shift_ref: (1, Cp)             f32   folded BN shift
    # w2_ref:    (Cp, NCp)           bf16  1x1 weights (Cin, Cout)
    # out_ref:   (1, TH, W, NCp)     f32
    x = xp_ref[0]                    # (TH+2, W+2, Cp) bf16
    THp = TH + 2

    acc = jnp.zeros((TH * W, Cp), dtype=jnp.float32)
    # 3x3 conv: 3 kw-shifted buffers (sublane relayout once per kw), each
    # reused for the 3 kh taps via leading-dim row slices (no relayout).
    for kw in range(3):
        xs = x[:, kw:kw + W, :].reshape(THp * W, Cp)        # (THp*W, Cp) bf16
        for kh in range(3):
            patch = xs[kh * W:kh * W + TH * W, :]           # (TH*W, Cp)
            acc = acc + jnp.dot(patch, w1_ref[kh * 3 + kw],
                                preferred_element_type=jnp.float32)

    # BN shift + ReLU fused in f32; one cast to bf16 for the 1x1 MXU matmul.
    y = jnp.maximum(acc + shift_ref[...], 0.0).astype(jnp.bfloat16)
    out = jnp.dot(y, w2_ref[...], preferred_element_type=jnp.float32)
    out_ref[0] = out.reshape(TH, W, NCp).astype(out_ref.dtype)


def out_conv_pallas(x_nchw, w1_oihw, gamma, beta, running_mean, running_var,
                    w2_oihw, eps=1e-5, tile_h=None):
    """Forward pass of out_conv.

    x_nchw:  (B, C, H, W)   float32  (PyTorch layout)
    w1_oihw: (C, C, 3, 3)   3x3 conv weight (out, in, kh, kw)
    w2_oihw: (NC, C, 1, 1)  1x1 conv weight (out, in, 1, 1)
    returns: (B, NC, H, W)  float32 (PyTorch layout)
    """
    B, C, H, W = x_nchw.shape
    NC = w2_oihw.shape[0]
    Cp = _round_up(C, 128)
    NCp = _round_up(NC, 128)
    Wp = W + 2

    # Fold BN (inference) into the 3x3 weights + a per-channel shift.
    scale = (gamma / jnp.sqrt(running_var + eps)).astype(jnp.float32)   # (C,)
    shift = (beta - running_mean * scale).astype(jnp.float32)           # (C,)

    # (Cout, Cin, kh, kw) -> (kh*kw, Cin, Cout), BN scale folded into Cout.
    w1 = jnp.transpose(w1_oihw, (2, 3, 1, 0)).reshape(9, C, C).astype(jnp.float32)
    w1 = w1 * scale[None, None, :]
    w1 = jnp.pad(w1, ((0, 0), (0, Cp - C), (0, Cp - C))).astype(jnp.bfloat16)

    # (NC, C, 1, 1) -> (C, NC), zero-padded to (Cp, NCp).
    w2 = jnp.transpose(w2_oihw[:, :, 0, 0], (1, 0)).astype(jnp.float32)
    w2 = jnp.pad(w2, ((0, Cp - C), (0, NCp - NC))).astype(jnp.bfloat16)

    shift_p = jnp.pad(shift, (0, Cp - C)).reshape(1, Cp)

    # NCHW -> NHWC (bf16 for the MXU), zero-pad H/W by 1 and channels to Cp.
    x_nhwc = jnp.transpose(x_nchw, (0, 2, 3, 1)).astype(jnp.bfloat16)
    x_pad = jnp.pad(x_nhwc, ((0, 0), (1, 1), (1, 1), (0, Cp - C)))

    # Spatial tiling over H (VMEM-budgeted; key for v7x's 64 MiB VMEM).
    TH = tile_h if tile_h is not None else _pick_tile_h(H, Wp, Cp, NCp)
    TH = max(1, min(TH, H))
    while H % TH:
        TH -= 1
    n_th = H // TH
    THp = TH + 2

    # Materialize halo'd row tiles once in XLA (2 duplicated rows per tile) so
    # every Pallas block is a plain rectangle and stays auto-pipelined.
    x_tiles = jnp.stack([x_pad[:, t * TH:t * TH + THp] for t in range(n_th)],
                        axis=1)                          # (B, n_th, THp, Wp, Cp)
    x_tiles = x_tiles.reshape(B * n_th, THp, Wp, Cp)

    kernel = functools.partial(_out_conv_kernel, TH=TH, W=W, Cp=Cp, NCp=NCp)
    cost = pl.CostEstimate(
        flops=int(2 * B * H * W * (9 * Cp * Cp + Cp * NCp)),
        transcendentals=0,
        bytes_accessed=int(x_tiles.size * 2 + w1.size * 2 + w2.size * 2 +
                           shift_p.size * 4 + B * H * W * NCp * 4))

    def _call(single_buffer_weights):
        if single_buffer_weights:
            # Grid-invariant operands do not need a second pipeline buffer.
            def wspec(shape):
                return pl.BlockSpec(shape, lambda *_: (0,) * len(shape),
                                    pipeline_mode=pl.Buffered(buffer_count=1))
        else:
            def wspec(shape):
                return pl.BlockSpec(shape, lambda *_: (0,) * len(shape))

        return pl.pallas_call(
            kernel,
            out_shape=jax.ShapeDtypeStruct((B, H, W, NCp), jnp.float32),
            grid_spec=pltpu.PrefetchScalarGridSpec(
                num_scalar_prefetch=0,
                grid=(B, n_th),
                in_specs=[
                    pl.BlockSpec((1, THp, Wp, Cp),
                                 lambda b, t: (b * n_th + t, 0, 0, 0)),
                    wspec((9, Cp, Cp)),
                    wspec((1, Cp)),
                    wspec((Cp, NCp)),
                ],
                out_specs=pl.BlockSpec((1, TH, W, NCp),
                                       lambda b, t: (b, t, 0, 0)),
            ),
            compiler_params=pltpu.CompilerParams(
                dimension_semantics=("parallel", "parallel"),
                vmem_limit_bytes=48 * 1024 * 1024),
            cost_estimate=cost,
        )(x_tiles, w1, shift_p, w2)

    try:
        out_nhwc = _call(True)      # single-buffered invariant weights
    except Exception:               # older Pallas: fall back to default buffering
        out_nhwc = _call(False)

    # Drop channel padding, NHWC -> NCHW to match PyTorch output layout.
    return jnp.transpose(out_nhwc[..., :NC], (0, 3, 1, 2))


def _reference(x_nchw, w1, gamma, beta, mean, var, w2, eps=1e-5):
    """Pure-JAX f32 reference using lax.conv (NCHW)."""
    y = jax.lax.conv_general_dilated(
        x_nchw, w1, window_strides=(1, 1), padding=((1, 1), (1, 1)),
        dimension_numbers=("NCHW", "OIHW", "NCHW"))
    scale = gamma / jnp.sqrt(var + eps)
    shift = beta - mean * scale
    y = y * scale[None, :, None, None] + shift[None, :, None, None]
    y = jnp.maximum(y, 0.0)
    out = jax.lax.conv_general_dilated(
        y, w2, window_strides=(1, 1), padding="VALID",
        dimension_numbers=("NCHW", "OIHW", "NCHW"))
    return out


if __name__ == "__main__":
    B, C, H, W = 2, 4, 16, 16
    NC = 3

    key = jax.random.PRNGKey(0)
    kx, kw1, kw2, kg, kb = jax.random.split(key, 5)

    x = jax.random.normal(kx, (B, C, H, W), dtype=jnp.float32)

    # Kaiming(normal) init for conv weights: std = sqrt(2 / fan_in).
    fan_in1 = C * 3 * 3
    w1 = jax.random.normal(kw1, (C, C, 3, 3), jnp.float32) * jnp.sqrt(2.0 / fan_in1)
    fan_in2 = C * 1 * 1
    w2 = jax.random.normal(kw2, (NC, C, 1, 1), jnp.float32) * jnp.sqrt(2.0 / fan_in2)

    # BatchNorm parameters (deterministic), inference-mode running stats.
    gamma = 1.0 + 0.1 * jax.random.normal(kg, (C,), jnp.float32)
    beta = 0.1 * jax.random.normal(kb, (C,), jnp.float32)
    running_mean = jnp.zeros((C,), jnp.float32)
    running_var = jnp.ones((C,), jnp.float32)

    # tile_h=8 exercises the spatially-tiled path: grid = (B, H // 8) = (2, 2).
    out = out_conv_pallas(x, w1, gamma, beta, running_mean, running_var, w2,
                          tile_h=8)
    out = jax.block_until_ready(out)

    ref = _reference(x, w1, gamma, beta, running_mean, running_var, w2)
    assert out.shape == (B, NC, H, W), out.shape
    # bf16 MXU operands (f32 accumulation) -> looser tolerance than pure f32.
    assert jnp.allclose(out, ref, atol=1e-1, rtol=1e-1), float(
        jnp.max(jnp.abs(out - ref)))

    print("KERNEL_OK")
</pallas_src>

<mosaic_0001>
module attributes {stable_mosaic.version = 11 : i64} {
  func.func @_out_conv_kernel(%arg0: i32, %arg1: i32, %arg2: memref<1x10x18x128xbf16, #tpu.memory_space<vmem>>, %arg3: memref<9x128x128xbf16, #tpu.memory_space<vmem>>, %arg4: memref<1x128xf32, #tpu.memory_space<vmem>>, %arg5: memref<128x128xbf16, #tpu.memory_space<vmem>>, %arg6: memref<1x8x16x128xf32, #tpu.memory_space<vmem>>) attributes {dimension_semantics = [#tpu.dimension_semantics<parallel>, #tpu.dimension_semantics<parallel>], iteration_bounds = array<i64: 2, 2>, scalar_prefetch = 0 : i64, scratch_operands = 0 : i64, tpu.core_type = #tpu.core_type<tc>, window_params = [{transform_indices = @transform_0, window_bounds = array<i64: 1, 10, 18, 128>}, {pipeline_mode = #tpu.pipeline_mode<synchronous>, transform_indices = @transform_1, window_bounds = array<i64: 9, 128, 128>}, {pipeline_mode = #tpu.pipeline_mode<synchronous>, transform_indices = @transform_2, window_bounds = array<i64: 1, 128>}, {pipeline_mode = #tpu.pipeline_mode<synchronous>, transform_indices = @transform_3, window_bounds = array<i64: 128, 128>}, {transform_indices = @transform_4, window_bounds = array<i64: 1, 8, 16, 128>}]} {
    %c0 = arith.constant 0 : index
    %c0_0 = arith.constant 0 : index
    %c0_1 = arith.constant 0 : index
    %c0_2 = arith.constant 0 : index
    %0 = vector.load %arg2[%c0, %c0_0, %c0_1, %c0_2] : memref<1x10x18x128xbf16, #tpu.memory_space<vmem>>, vector<1x10x18x128xbf16>
    %1 = vector.shape_cast %0 : vector<1x10x18x128xbf16> to vector<10x18x128xbf16>
    %cst = arith.constant 0.000000e+00 : f32
    %2 = vector.broadcast %cst : f32 to vector<128x128xf32>
    %3 = vector.extract_strided_slice %1 {offsets = [0, 0, 0], sizes = [10, 16, 128], strides = [1, 1, 1]} : vector<10x18x128xbf16> to vector<10x16x128xbf16>
    %4 = vector.shape_cast %3 : vector<10x16x128xbf16> to vector<160x128xbf16>
    %5 = vector.extract_strided_slice %4 {offsets = [0, 0], sizes = [128, 128], strides = [1, 1]} : vector<160x128xbf16> to vector<128x128xbf16>
    %c0_3 = arith.constant 0 : index
    %c0_4 = arith.constant 0 : index
    %c0_5 = arith.constant 0 : index
    %6 = vector.load %arg3[%c0_3, %c0_4, %c0_5] : memref<9x128x128xbf16, #tpu.memory_space<vmem>>, vector<1x128x128xbf16>
    %7 = vector.shape_cast %6 : vector<1x128x128xbf16> to vector<128x128xbf16>
    %cst_6 = arith.constant dense<0.000000e+00> : vector<128x128xf32>
    %8 = tpu.matmul %5, %7, %cst_6 {dimension_numbers = #tpu.dot_dimension_numbers<[1], [0], [0], [1], [0, 0, 1, 1], [], []>} : vector<128x128xbf16>, vector<128x128xbf16>, vector<128x128xf32> -> vector<128x128xf32>
    %9 = arith.addf %2, %8 : vector<128x128xf32>
    %10 = vector.extract_strided_slice %4 {offsets = [16, 0], sizes = [128, 128], strides = [1, 1]} : vector<160x128xbf16> to vector<128x128xbf16>
    %c3 = arith.constant 3 : index
    %c0_7 = arith.constant 0 : index
    %c0_8 = arith.constant 0 : index
    %11 = vector.load %arg3[%c3, %c0_7, %c0_8] : memref<9x128x128xbf16, #tpu.memory_space<vmem>>, vector<1x128x128xbf16>
    %12 = vector.shape_cast %11 : vector<1x128x128xbf16> to vector<128x128xbf16>
    %cst_9 = arith.constant dense<0.000000e+00> : vector<128x128xf32>
    %13 = tpu.matmul %10, %12, %cst_9 {dimension_numbers = #tpu.dot_dimension_numbers<[1], [0], [0], [1], [0, 0, 1, 1], [], []>} : vector<128x128xbf16>, vector<128x128xbf16>, vector<128x128xf32> -> vector<128x128xf32>
    %14 = arith.addf %9, %13 : vector<128x128xf32>
    %15 = vector.extract_strided_slice %4 {offsets = [32, 0], sizes = [128, 128], strides = [1, 1]} : vector<160x128xbf16> to vector<128x128xbf16>
    %c6 = arith.constant 6 : index
    %c0_10 = arith.constant 0 : index
    %c0_11 = arith.constant 0 : index
    %16 = vector.load %arg3[%c6, %c0_10, %c0_11] : memref<9x128x128xbf16, #tpu.memory_space<vmem>>, vector<1x128x128xbf16>
    %17 = vector.shape_cast %16 : vector<1x128x128xbf16> to vector<128x128xbf16>
    %cst_12 = arith.constant dense<0.000000e+00> : vector<128x128xf32>
    %18 = tpu.matmul %15, %17, %cst_12 {dimension_numbers = #tpu.dot_dimension_numbers<[1], [0], [0], [1], [0, 0, 1, 1], [], []>} : vector<128x128xbf16>, vector<128x128xbf16>, vector<128x128xf32> -> vector<128x128xf32>
    %19 = arith.addf %14, %18 : vector<128x128xf32>
    %20 = vector.extract_strided_slice %1 {offsets = [0, 1, 0], sizes = [10, 16, 128], strides = [1, 1, 1]} : vector<10x18x128xbf16> to vector<10x16x128xbf16>
    %21 = vector.shape_cast %20 : vector<10x16x128xbf16> to vector<160x128xbf16>
    %22 = vector.extract_strided_slice %21 {offsets = [0, 0], sizes = [128, 128], strides = [1, 1]} : vector<160x128xbf16> to vector<128x128xbf16>
    %c1 = arith.constant 1 : index
    %c0_13 = arith.constant 0 : index
    %c0_14 = arith.constant 0 : index
    %23 = vector.load %arg3[%c1, %c0_13, %c0_14] : memref<9x128x128xbf16, #tpu.memory_space<vmem>>, vector<1x128x128xbf16>
    %24 = vector.shape_cast %23 : vector<1x128x128xbf16> to vector<128x128xbf16>
    %cst_15 = arith.constant dense<0.000000e+00> : vector<128x128xf32>
    %25 = tpu.matmul %22, %24, %cst_15 {dimension_numbers = #tpu.dot_dimension_numbers<[1], [0], [0], [1], [0, 0, 1, 1], [], []>} : vector<128x128xbf16>, vector<128x128xbf16>, vector<128x128xf32> -> vector<128x128xf32>
    %26 = arith.addf %19, %25 : vector<128x128xf32>
    %27 = vector.extract_strided_slice %21 {offsets = [16, 0], sizes = [128, 128], strides = [1, 1]} : vector<160x128xbf16> to vector<128x128xbf16>
    %c4 = arith.constant 4 : index
    %c0_16 = arith.constant 0 : index
    %c0_17 = arith.constant 0 : index
    %28 = vector.load %arg3[%c4, %c0_16, %c0_17] : memref<9x128x128xbf16, #tpu.memory_space<vmem>>, vector<1x128x128xbf16>
    %29 = vector.shape_cast %28 : vector<1x128x128xbf16> to vector<128x128xbf16>
    %cst_18 = arith.constant dense<0.000000e+00> : vector<128x128xf32>
    %30 = tpu.matmul %27, %29, %cst_18 {dimension_numbers = #tpu.dot_dimension_numbers<[1], [0], [0], [1], [0, 0, 1, 1], [], []>} : vector<128x128xbf16>, vector<128x128xbf16>, vector<128x128xf32> -> vector<128x128xf32>
    %31 = arith.addf %26, %30 : vector<128x128xf32>
    %32 = vector.extract_strided_slice %21 {offsets = [32, 0], sizes = [128, 128], strides = [1, 1]} : vector<160x128xbf16> to vector<128x128xbf16>
    %c7 = arith.constant 7 : index
    %c0_19 = arith.constant 0 : index
    %c0_20 = arith.constant 0 : index
    %33 = vector.load %arg3[%c7, %c0_19, %c0_20] : memref<9x128x128xbf16, #tpu.memory_space<vmem>>, vector<1x128x128xbf16>
    %34 = vector.shape_cast %33 : vector<1x128x128xbf16> to vector<128x128xbf16>
    %cst_21 = arith.constant dense<0.000000e+00> : vector<128x128xf32>
    %35 = tpu.matmul %32, %34, %cst_21 {dimension_numbers = #tpu.dot_dimension_numbers<[1], [0], [0], [1], [0, 0, 1, 1], [], []>} : vector<128x128xbf16>, vector<128x128xbf16>, vector<128x128xf32> -> vector<128x128xf32>
    %36 = arith.addf %31, %35 : vector<128x128xf32>
    %37 = vector.extract_strided_slice %1 {offsets = [0, 2, 0], sizes = [10, 16, 128], strides = [1, 1, 1]} : vector<10x18x128xbf16> to vector<10x16x128xbf16>
    %38 = vector.shape_cast %37 : vector<10x16x128xbf16> to vector<160x128xbf16>
    %39 = vector.extract_strided_slice %38 {offsets = [0, 0], sizes = [128, 128], strides = [1, 1]} : vector<160x128xbf16> to vector<128x128xbf16>
    %c2 = arith.constant 2 : index
    %c0_22 = arith.constant 0 : index
    %c0_23 = arith.constant 0 : index
    %40 = vector.load %arg3[%c2, %c0_22, %c0_23] : memref<9x128x128xbf16, #tpu.memory_space<vmem>>, vector<1x128x128xbf16>
    %41 = vector.shape_cast %40 : vector<1x128x128xbf16> to vector<128x128xbf16>
    %cst_24 = arith.constant dense<0.000000e+00> : vector<128x128xf32>
    %42 = tpu.matmul %39, %41, %cst_24 {dimension_numbers = #tpu.dot_dimension_numbers<[1], [0], [0], [1], [0, 0, 1, 1], [], []>} : vector<128x128xbf16>, vector<128x128xbf16>, vector<128x128xf32> -> vector<128x128xf32>
    %43 = arith.addf %36, %42 : vector<128x128xf32>
    %44 = vector.extract_strided_slice %38 {offsets = [16, 0], sizes = [128, 128], strides = [1, 1]} : vector<160x128xbf16> to vector<128x128xbf16>
    %c5 = arith.constant 5 : index
    %c0_25 = arith.constant 0 : index
    %c0_26 = arith.constant 0 : index
    %45 = vector.load %arg3[%c5, %c0_25, %c0_26] : memref<9x128x128xbf16, #tpu.memory_space<vmem>>, vector<1x128x128xbf16>
    %46 = vector.shape_cast %45 : vector<1x128x128xbf16> to vector<128x128xbf16>
    %cst_27 = arith.constant dense<0.000000e+00> : vector<128x128xf32>
    %47 = tpu.matmul %44, %46, %cst_27 {dimension_numbers = #tpu.dot_dimension_numbers<[1], [0], [0], [1], [0, 0, 1, 1], [], []>} : vector<128x128xbf16>, vector<128x128xbf16>, vector<128x128xf32> -> vector<128x128xf32>
    %48 = arith.addf %43, %47 : vector<128x128xf32>
    %49 = vector.extract_strided_slice %38 {offsets = [32, 0], sizes = [128, 128], strides = [1, 1]} : vector<160x128xbf16> to vector<128x128xbf16>
    %c8 = arith.constant 8 : index
    %c0_28 = arith.constant 0 : index
    %c0_29 = arith.constant 0 : index
    %50 = vector.load %arg3[%c8, %c0_28, %c0_29] : memref<9x128x128xbf16, #tpu.memory_space<vmem>>, vector<1x128x128xbf16>
    %51 = vector.shape_cast %50 : vector<1x128x128xbf16> to vector<128x128xbf16>
    %cst_30 = arith.constant dense<0.000000e+00> : vector<128x128xf32>
    %52 = tpu.matmul %49, %51, %cst_30 {dimension_numbers = #tpu.dot_dimension_numbers<[1], [0], [0], [1], [0, 0, 1, 1], [], []>} : vector<128x128xbf16>, vector<128x128xbf16>, vector<128x128xf32> -> vector<128x128xf32>
    %53 = arith.addf %48, %52 : vector<128x128xf32>
    %c0_31 = arith.constant 0 : index
    %c0_32 = arith.constant 0 : index
    %54 = vector.load %arg4[%c0_31, %c0_32] : memref<1x128xf32, #tpu.memory_space<vmem>>, vector<1x128xf32>
    %55 = vector.broadcast %54 : vector<1x128xf32> to vector<128x128xf32>
    %56 = arith.addf %53, %55 : vector<128x128xf32>
    %cst_33 = arith.constant 0.000000e+00 : f32
    %57 = vector.broadcast %cst_33 : f32 to vector<128x128xf32>
    %58 = arith.maximumf %56, %57 : vector<128x128xf32>
    %59 = arith.truncf %58 : vector<128x128xf32> to vector<128x128xbf16>
    %c0_34 = arith.constant 0 : index
    %c0_35 = arith.constant 0 : index
    %60 = vector.load %arg5[%c0_34, %c0_35] : memref<128x128xbf16, #tpu.memory_space<vmem>>, vector<128x128xbf16>
    %cst_36 = arith.constant dense<0.000000e+00> : vector<128x128xf32>
    %61 = tpu.matmul %59, %60, %cst_36 {dimension_numbers = #tpu.dot_dimension_numbers<[1], [0], [0], [1], [0, 0, 1, 1], [], []>} : vector<128x128xbf16>, vector<128x128xbf16>, vector<128x128xf32> -> vector<128x128xf32>
    %62 = vector.shape_cast %61 : vector<128x128xf32> to vector<8x16x128xf32>
    %c0_37 = arith.constant 0 : index
    %c0_38 = arith.constant 0 : index
    %c0_39 = arith.constant 0 : index
    %c0_40 = arith.constant 0 : index
    %63 = vector.load %arg6[%c0_37, %c0_38, %c0_39, %c0_40] : memref<1x8x16x128xf32, #tpu.memory_space<vmem>>, vector<1x8x16x128xf32>
    %64 = vector.shape_cast %63 : vector<1x8x16x128xf32> to vector<8x16x128xf32>
    %65 = vector.shape_cast %62 : vector<8x16x128xf32> to vector<1x8x16x128xf32>
    tpu.vector_store %arg6[%c0_37, %c0_38, %c0_39, %c0_40], %65 {strides = array<i32>} : memref<1x8x16x128xf32, #tpu.memory_space<vmem>>, vector<1x8x16x128xf32>,
    return
  }
  func.func @transform_0(%arg0: i32, %arg1: i32) -> (i32, i32, i32, i32) {
    %c2_i32 = arith.constant 2 : i32
    %0 = arith.muli %arg0, %c2_i32 : i32
    %1 = arith.addi %0, %arg1 : i32
    %c0_i32 = arith.constant 0 : i32
    %c0_i32_0 = arith.constant 0 : i32
    %c0_i32_1 = arith.constant 0 : i32
    %c0_i32_2 = arith.constant 0 : i32
    return %1, %c0_i32, %c0_i32_0, %c0_i32_1 : i32, i32, i32, i32
  }
  func.func @transform_1(%arg0: i32, %arg1: i32) -> (i32, i32, i32) {
    %c0_i32 = arith.constant 0 : i32
    %c0_i32_0 = arith.constant 0 : i32
    %c0_i32_1 = arith.constant 0 : i32
    %c0_i32_2 = arith.constant 0 : i32
    return %c0_i32, %c0_i32_0, %c0_i32_1 : i32, i32, i32
  }
  func.func @transform_2(%arg0: i32, %arg1: i32) -> (i32, i32) {
    %c0_i32 = arith.constant 0 : i32
    %c0_i32_0 = arith.constant 0 : i32
    %c0_i32_1 = arith.constant 0 : i32
    return %c0_i32, %c0_i32_0 : i32, i32
  }
  func.func @transform_3(%arg0: i32, %arg1: i32) -> (i32, i32) {
    %c0_i32 = arith.constant 0 : i32
    %c0_i32_0 = arith.constant 0 : i32
    %c0_i32_1 = arith.constant 0 : i32
    return %c0_i32, %c0_i32_0 : i32, i32
  }
  func.func @transform_4(%arg0: i32, %arg1: i32) -> (i32, i32, i32, i32) {
    %c0_i32 = arith.constant 0 : i32
    %c0_i32_0 = arith.constant 0 : i32
    %c0_i32_1 = arith.constant 0 : i32
    return %arg0, %arg1, %c0_i32, %c0_i32_0 : i32, i32, i32, i32
  }
}

module attributes {stable_mosaic.version = 11 : i64} {
  func.func @_out_conv_kernel(%arg0: i32, %arg1: i32, %arg2: memref<1x10x18x128xbf16, #tpu.memory_space<vmem>>, %arg3: memref<9x128x128xbf16, #tpu.memory_space<vmem>>, %arg4: memref<1x128xf32, #tpu.memory_space<vmem>>, %arg5: memref<128x128xbf16, #tpu.memory_space<vmem>>, %arg6: memref<1x8x16x128xf32, #tpu.memory_space<vmem>>) attributes {dimension_semantics = [#tpu.dimension_semantics<parallel>, #tpu.dimension_semantics<parallel>], iteration_bounds = array<i64: 2, 2>, scalar_prefetch = 0 : i64, scratch_operands = 0 : i64, tpu.core_type = #tpu.core_type<tc>, window_params = [{transform_indices = @transform_0, window_bounds = array<i64: 1, 10, 18, 128>}, {pipeline_mode = #tpu.pipeline_mode<synchronous>, transform_indices = @transform_1, window_bounds = array<i64: 9, 128, 128>}, {pipeline_mode = #tpu.pipeline_mode<synchronous>, transform_indices = @transform_2, window_bounds = array<i64: 1, 128>}, {pipeline_mode = #tpu.pipeline_mode<synchronous>, transform_indices = @transform_3, window_bounds = array<i64: 128, 128>}, {transform_indices = @transform_4, window_bounds = array<i64: 1, 8, 16, 128>}]} {
    %c0 = arith.constant 0 : index
    %c0_0 = arith.constant 0 : index
    %c0_1 = arith.constant 0 : index
    %c0_2 = arith.constant 0 : index
    %0 = vector.load %arg2[%c0, %c0_0, %c0_1, %c0_2] : memref<1x10x18x128xbf16, #tpu.memory_space<vmem>>, vector<1x10x18x128xbf16>
    %1 = vector.shape_cast %0 : vector<1x10x18x128xbf16> to vector<10x18x128xbf16>
    %cst = arith.constant 0.000000e+00 : f32
    %2 = vector.broadcast %cst : f32 to vector<128x128xf32>
    %3 = vector.extract_strided_slice %1 {offsets = [0, 0, 0], sizes = [10, 16, 128], strides = [1, 1, 1]} : vector<10x18x128xbf16> to vector<10x16x128xbf16>
    %4 = vector.shape_cast %3 : vector<10x16x128xbf16> to vector<160x128xbf16>
    %5 = vector.extract_strided_slice %4 {offsets = [0, 0], sizes = [128, 128], strides = [1, 1]} : vector<160x128xbf16> to vector<128x128xbf16>
    %c0_3 = arith.constant 0 : index
    %c0_4 = arith.constant 0 : index
    %c0_5 = arith.constant 0 : index
    %6 = vector.load %arg3[%c0_3, %c0_4, %c0_5] : memref<9x128x128xbf16, #tpu.memory_space<vmem>>, vector<1x128x128xbf16>
    %7 = vector.shape_cast %6 : vector<1x128x128xbf16> to vector<128x128xbf16>
    %cst_6 = arith.constant dense<0.000000e+00> : vector<128x128xf32>
    %8 = tpu.matmul %5, %7, %cst_6 {dimension_numbers = #tpu.dot_dimension_numbers<[1], [0], [0], [1], [0, 0, 1, 1], [], []>} : vector<128x128xbf16>, vector<128x128xbf16>, vector<128x128xf32> -> vector<128x128xf32>
    %9 = arith.addf %2, %8 : vector<128x128xf32>
    %10 = vector.extract_strided_slice %4 {offsets = [16, 0], sizes = [128, 128], strides = [1, 1]} : vector<160x128xbf16> to vector<128x128xbf16>
    %c3 = arith.constant 3 : index
    %c0_7 = arith.constant 0 : index
    %c0_8 = arith.constant 0 : index
    %11 = vector.load %arg3[%c3, %c0_7, %c0_8] : memref<9x128x128xbf16, #tpu.memory_space<vmem>>, vector<1x128x128xbf16>
    %12 = vector.shape_cast %11 : vector<1x128x128xbf16> to vector<128x128xbf16>
    %cst_9 = arith.constant dense<0.000000e+00> : vector<128x128xf32>
    %13 = tpu.matmul %10, %12, %cst_9 {dimension_numbers = #tpu.dot_dimension_numbers<[1], [0], [0], [1], [0, 0, 1, 1], [], []>} : vector<128x128xbf16>, vector<128x128xbf16>, vector<128x128xf32> -> vector<128x128xf32>
    %14 = arith.addf %9, %13 : vector<128x128xf32>
    %15 = vector.extract_strided_slice %4 {offsets = [32, 0], sizes = [128, 128], strides = [1, 1]} : vector<160x128xbf16> to vector<128x128xbf16>
    %c6 = arith.constant 6 : index
    %c0_10 = arith.constant 0 : index
    %c0_11 = arith.constant 0 : index
    %16 = vector.load %arg3[%c6, %c0_10, %c0_11] : memref<9x128x128xbf16, #tpu.memory_space<vmem>>, vector<1x128x128xbf16>
    %17 = vector.shape_cast %16 : vector<1x128x128xbf16> to vector<128x128xbf16>
    %cst_12 = arith.constant dense<0.000000e+00> : vector<128x128xf32>
    %18 = tpu.matmul %15, %17, %cst_12 {dimension_numbers = #tpu.dot_dimension_numbers<[1], [0], [0], [1], [0, 0, 1, 1], [], []>} : vector<128x128xbf16>, vector<128x128xbf16>, vector<128x128xf32> -> vector<128x128xf32>
    %19 = arith.addf %14, %18 : vector<128x128xf32>
    %20 = vector.extract_strided_slice %1 {offsets = [0, 1, 0], sizes = [10, 16, 128], strides = [1, 1, 1]} : vector<10x18x128xbf16> to vector<10x16x128xbf16>
    %21 = vector.shape_cast %20 : vector<10x16x128xbf16> to vector<160x128xbf16>
    %22 = vector.extract_strided_slice %21 {offsets = [0, 0], sizes = [128, 128], strides = [1, 1]} : vector<160x128xbf16> to vector<128x128xbf16>
    %c1 = arith.constant 1 : index
    %c0_13 = arith.constant 0 : index
    %c0_14 = arith.constant 0 : index
    %23 = vector.load %arg3[%c1, %c0_13, %c0_14] : memref<9x128x128xbf16, #tpu.memory_space<vmem>>, vector<1x128x128xbf16>
    %24 = vector.shape_cast %23 : vector<1x128x128xbf16> to vector<128x128xbf16>
    %cst_15 = arith.constant dense<0.000000e+00> : vector<128x128xf32>
    %25 = tpu.matmul %22, %24, %cst_15 {dimension_numbers = #tpu.dot_dimension_numbers<[1], [0], [0], [1], [0, 0, 1, 1], [], []>} : vector<128x128xbf16>, vector<128x128xbf16>, vector<128x128xf32> -> vector<128x128xf32>
    %26 = arith.addf %19, %25 : vector<128x128xf32>
    %27 = vector.extract_strided_slice %21 {offsets = [16, 0], sizes = [128, 128], strides = [1, 1]} : vector<160x128xbf16> to vector<128x128xbf16>
    %c4 = arith.constant 4 : index
    %c0_16 = arith.constant 0 : index
    %c0_17 = arith.constant 0 : index
    %28 = vector.load %arg3[%c4, %c0_16, %c0_17] : memref<9x128x128xbf16, #tpu.memory_space<vmem>>, vector<1x128x128xbf16>
    %29 = vector.shape_cast %28 : vector<1x128x128xbf16> to vector<128x128xbf16>
    %cst_18 = arith.constant dense<0.000000e+00> : vector<128x128xf32>
    %30 = tpu.matmul %27, %29, %cst_18 {dimension_numbers = #tpu.dot_dimension_numbers<[1], [0], [0], [1], [0, 0, 1, 1], [], []>} : vector<128x128xbf16>, vector<128x128xbf16>, vector<128x128xf32> -> vector<128x128xf32>
    %31 = arith.addf %26, %30 : vector<128x128xf32>
    %32 = vector.extract_strided_slice %21 {offsets = [32, 0], sizes = [128, 128], strides = [1, 1]} : vector<160x128xbf16> to vector<128x128xbf16>
    %c7 = arith.constant 7 : index
    %c0_19 = arith.constant 0 : index
    %c0_20 = arith.constant 0 : index
    %33 = vector.load %arg3[%c7, %c0_19, %c0_20] : memref<9x128x128xbf16, #tpu.memory_space<vmem>>, vector<1x128x128xbf16>
    %34 = vector.shape_cast %33 : vector<1x128x128xbf16> to vector<128x128xbf16>
    %cst_21 = arith.constant dense<0.000000e+00> : vector<128x128xf32>
    %35 = tpu.matmul %32, %34, %cst_21 {dimension_numbers = #tpu.dot_dimension_numbers<[1], [0], [0], [1], [0, 0, 1, 1], [], []>} : vector<128x128xbf16>, vector<128x128xbf16>, vector<128x128xf32> -> vector<128x128xf32>
    %36 = arith.addf %31, %35 : vector<128x128xf32>
    %37 = vector.extract_strided_slice %1 {offsets = [0, 2, 0], sizes = [10, 16, 128], strides = [1, 1, 1]} : vector<10x18x128xbf16> to vector<10x16x128xbf16>
    %38 = vector.shape_cast %37 : vector<10x16x128xbf16> to vector<160x128xbf16>
    %39 = vector.extract_strided_slice %38 {offsets = [0, 0], sizes = [128, 128], strides = [1, 1]} : vector<160x128xbf16> to vector<128x128xbf16>
    %c2 = arith.constant 2 : index
    %c0_22 = arith.constant 0 : index
    %c0_23 = arith.constant 0 : index
    %40 = vector.load %arg3[%c2, %c0_22, %c0_23] : memref<9x128x128xbf16, #tpu.memory_space<vmem>>, vector<1x128x128xbf16>
    %41 = vector.shape_cast %40 : vector<1x128x128xbf16> to vector<128x128xbf16>
    %cst_24 = arith.constant dense<0.000000e+00> : vector<128x128xf32>
    %42 = tpu.matmul %39, %41, %cst_24 {dimension_numbers = #tpu.dot_dimension_numbers<[1], [0], [0], [1], [0, 0, 1, 1], [], []>} : vector<128x128xbf16>, vector<128x128xbf16>, vector<128x128xf32> -> vector<128x128xf32>
    %43 = arith.addf %36, %42 : vector<128x128xf32>
    %44 = vector.extract_strided_slice %38 {offsets = [16, 0], sizes = [128, 128], strides = [1, 1]} : vector<160x128xbf16> to vector<128x128xbf16>
    %c5 = arith.constant 5 : index
    %c0_25 = arith.constant 0 : index
    %c0_26 = arith.constant 0 : index
    %45 = vector.load %arg3[%c5, %c0_25, %c0_26] : memref<9x128x128xbf16, #tpu.memory_space<vmem>>, vector<1x128x128xbf16>
    %46 = vector.shape_cast %45 : vector<1x128x128xbf16> to vector<128x128xbf16>
    %cst_27 = arith.constant dense<0.000000e+00> : vector<128x128xf32>
    %47 = tpu.matmul %44, %46, %cst_27 {dimension_numbers = #tpu.dot_dimension_numbers<[1], [0], [0], [1], [0, 0, 1, 1], [], []>} : vector<128x128xbf16>, vector<128x128xbf16>, vector<128x128xf32> -> vector<128x128xf32>
    %48 = arith.addf %43, %47 : vector<128x128xf32>
    %49 = vector.extract_strided_slice %38 {offsets = [32, 0], sizes = [128, 128], strides = [1, 1]} : vector<160x128xbf16> to vector<128x128xbf16>
    %c8 = arith.constant 8 : index
    %c0_28 = arith.constant 0 : index
    %c0_29 = arith.constant 0 : index
    %50 = vector.load %arg3[%c8, %c0_28, %c0_29] : memref<9x128x128xbf16, #tpu.memory_space<vmem>>, vector<1x128x128xbf16>
    %51 = vector.shape_cast %50 : vector<1x128x128xbf16> to vector<128x128xbf16>
    %cst_30 = arith.constant dense<0.000000e+00> : vector<128x128xf32>
    %52 = tpu.matmul %49, %51, %cst_30 {dimension_numbers = #tpu.dot_dimension_numbers<[1], [0], [0], [1], [0, 0, 1, 1], [], []>} : vector<128x128xbf16>, vector<128x128xbf16>, vector<128x128xf32> -> vector<128x128xf32>
    %53 = arith.addf %48, %52 : vector<128x128xf32>
    %c0_31 = arith.constant 0 : index
    %c0_32 = arith.constant 0 : index
    %54 = vector.load %arg4[%c0_31, %c0_32] : memref<1x128xf32, #tpu.memory_space<vmem>>, vector<1x128xf32>
    %55 = vector.broadcast %54 : vector<1x128xf32> to vector<128x128xf32>
    %56 = arith.addf %53, %55 : vector<128x128xf32>
    %cst_33 = arith.constant 0.000000e+00 : f32
    %57 = vector.broadcast %cst_33 : f32 to vector<128x128xf32>
    %58 = arith.maximumf %56, %57 : vector<128x128xf32>
    %59 = arith.truncf %58 : vector<128x128xf32> to vector<128x128xbf16>
    %c0_34 = arith.constant 0 : index
    %c0_35 = arith.constant 0 : index
    %60 = vector.load %arg5[%c0_34, %c0_35] : memref<128x128xbf16, #tpu.memory_space<vmem>>, vector<128x128xbf16>
    %cst_36 = arith.constant dense<0.000000e+00> : vector<128x128xf32>
    %61 = tpu.matmul %59, %60, %cst_36 {dimension_numbers = #tpu.dot_dimension_numbers<[1], [0], [0], [1], [0, 0, 1, 1], [], []>} : vector<128x128xbf16>, vector<128x128xbf16>, vector<128x128xf32> -> vector<128x128xf32>
    %62 = vector.shape_cast %61 : vector<128x128xf32> to vector<8x16x128xf32>
    %c0_37 = arith.constant 0 : index
    %c0_38 = arith.constant 0 : index
    %c0_39 = arith.constant 0 : index
    %c0_40 = arith.constant 0 : index
    %63 = vector.load %arg6[%c0_37, %c0_38, %c0_39, %c0_40] : memref<1x8x16x128xf32, #tpu.memory_space<vmem>>, vector<1x8x16x128xf32>
    %64 = vector.shape_cast %63 : vector<1x8x16x128xf32> to vector<8x16x128xf32>
    %65 = vector.shape_cast %62 : vector<8x16x128xf32> to vector<1x8x16x128xf32>
    tpu.vector_store %arg6[%c0_37, %c0_38, %c0_39, %c0_40], %65 {strides = array<i32>} : memref<1x8x16x128xf32, #tpu.memory_space<vmem>>, vector<1x8x16x128xf32>,
    return
  }
  func.func @transform_0(%arg0: i32, %arg1: i32) -> (i32, i32, i32, i32) {
    %c2_i32 = arith.constant 2 : i32
    %0 = arith.muli %arg0, %c2_i32 : i32
    %1 = arith.addi %0, %arg1 : i32
    %c0_i32 = arith.constant 0 : i32
    %c0_i32_0 = arith.constant 0 : i32
    %c0_i32_1 = arith.constant 0 : i32
    %c0_i32_2 = arith.constant 0 : i32
    return %1, %c0_i32, %c0_i32_0, %c0_i32_1 : i32, i32, i32, i32
  }
  func.func @transform_1(%arg0: i32, %arg1: i32) -> (i32, i32, i32) {
    %c0_i32 = arith.constant 0 : i32
    %c0_i32_0 = arith.constant 0 : i32
    %c0_i32_1 = arith.constant 0 : i32
    %c0_i32_2 = arith.constant 0 : i32
    return %c0_i32, %c0_i32_0, %c0_i32_1 : i32, i32, i32
  }
  func.func @transform_2(%arg0: i32, %arg1: i32) -> (i32, i32) {
    %c0_i32 = arith.constant 0 : i32
    %c0_i32_0 = arith.constant 0 : i32
    %c0_i32_1 = arith.constant 0 : i32
    return %c0_i32, %c0_i32_0 : i32, i32
  }
  func.func @transform_3(%arg0: i32, %arg1: i32) -> (i32, i32) {
    %c0_i32 = arith.constant 0 : i32
    %c0_i32_0 = arith.constant 0 : i32
    %c0_i32_1 = arith.constant 0 : i32
    return %c0_i32, %c0_i32_0 : i32, i32
  }
  func.func @transform_4(%arg0: i32, %arg1: i32) -> (i32, i32, i32, i32) {
    %c0_i32 = arith.constant 0 : i32
    %c0_i32_0 = arith.constant 0 : i32
    %c0_i32_1 = arith.constant 0 : i32
    return %arg0, %arg1, %c0_i32, %c0_i32_0 : i32, i32, i32, i32
  }
}

</mosaic_0001>

<bundles_post_ra>
// kernel: tpu_custom_call.1
= control target key start
LH: loop header
LB: loop body
LE: loop exit
PB: predicated region body
PF: predicated region fallthrough
CT: control target
= control target key end

     0   :  { %9 = vsyncpa [#allocation3], 0  ;;  %s4609_s0 = inlined_call_operand.vmem [shape: bf16[4,10,18,128], index: 0, kind: input, shape index: {}]   ;;  %s4610_s1 = inlined_call_operand.vmem [shape: bf16[9,128,128], index: 1, kind: input, shape index: {}]   ;;  %s4611_s2 = inlined_call_operand.vmem [shape: f32[1,128], index: 2, kind: input, shape index: {}]   ;;  %s4612_s3 = inlined_call_operand.vmem [shape: bf16[128,128], index: 3, kind: input, shape index: {}]   ;;  %s4613_s4 = inlined_call_operand.hbm [shape: f32[2,16,16,128], index: 4, kind: output, shape index: {}]  }
   0x1   :  { %11 = vsyncpa [#allocation3 + $0x1], 0  ;;  %s3771_s15 = smov 0   ;;  %s3773_s16 = smov 0  }
   0x2   :  { %s3775_s17 = smov 0   ;;  %s3777_s18 = smov 0  }
   0x3   :  { %s3779_s19 = smov 0   ;;  %s3781_s20 = smov 0  }
   0x4   :  { %s3783_s21 = smov 0   ;;  %s3785_s22 = smov 0  }
   0x5 LB: > { %s2608_s23 = sadd.s32 4294967295, %s3741_s22   ;;  %s2609_s24 = sadd.s32 4294967294, %s3741_s22   ;;  %s3741_s22 = sphi %s3785_s22, %s17_s22   ;;  %s3737_s21 = sphi %s3783_s21, %s4629_s21   ;;  %s3733_s20 = sphi %s3781_s20, %s4628_s20   ;;  %s3729_s19 = sphi %s3779_s19, %s4627_s19   ;;  %s3725_s18 = sphi %s3777_s18, %s4626_s18   ;;  %s3721_s17 = sphi %s3775_s17, %s4625_s17   ;;  %s3717_s16 = sphi %s3773_s16, %s4624_s16   ;;  %s3713_s15 = sphi %s3771_s15, %s4623_s15  }
   0x6   : > { %s26_s25 = sadd.s32 1, %s3733_s20  ;;  %s29_s26 = sadd.s32 1, %s3737_s21 }
   0x7   : > { %p27_p0 = scmp.ge.s32.totalorder %s26_s25, 2  ;;  %p141_p1 = scmp.ne.s32.totalorder %s3721_s17, %s3717_s16 }
   0x8   : > { %p142_p2 = scmp.eq.s32.totalorder %s2608_s23, 3  ;;  %p147_p5 = scmp.ne.s32.totalorder %s3717_s16, %s3713_s15 }
   0x9   : > { %s4631_s25 = smov (%p27_p0, %s26_s25), 0  ;;  %s4633_s26 = smov (!%p27_p0, %s29_s26), %s3737_s21 }
   0xa   : > { %s127_s27 = ssub.s32 %s3733_s20, %s4631_s25  ;;  %p3822_p3 = por %p142_p2, %p141_p1 }
   0xb   : > { %p31_p4 = scmp.ge.s32.totalorder %s4633_s26, 2  ;;  %p148_p6 = scmp.eq.s32.totalorder %s2609_s24, 3 }
   0xc   : > { %p2614_p7 = scmp.ge.s32.totalorder %s3741_s22, 1  ;;  %p187_p9 = scmp.lt.s32.totalorder %s3741_s22, 5 }
   0xd   : > { %s4635_s26 = smov (%p31_p4, %s4633_s26), 0  ;;  %p3831_p8 = por %p148_p6, %p147_p5 }
   0xe   : > { %s126_s30 = ssub.s32 %s3737_s21, %s4635_s26  ;;  %s131_s5 = sadd.s32 1, %s3721_s17 }
   0xf   : > { %s128_s6 = sor.u32 %s127_s27, %s126_s30  ;;  %p188_p10 = pnand %p2614_p7, %p187_p9 }
  0x10   : > { %p129_p11 = scmp.eq.s32.totalorder %s128_s6, 0  ;;  %v3557_v0 = vld [vmem:[%s4610_s1 + $0xc0] sm:$0xff] (!%p188_p10)   ;;  %s2616_s10 = sshll.u32 (!%p188_p10), %s3729_s19, 1  ;;  %v3559_v2 = vld [vmem:[%s4610_s1 + $0xc8] sm:$0xff] (!%p188_p10)   ;;  %v3561_v4 = vld [vmem:[%s4610_s1 + $0xd0] sm:$0xff] (!%p188_p10)   ;;  %vm1644_vm0 = vcmask (!%p188_p10), 1042432  }
  0x11   : > { %191 = sbr.rel (%p188_p10) target bundleno = 661 (0x295), region = 36  ;;  %v3558_v1 = vld [vmem:[%s4610_s1 + $0x100] sm:$0xff] (!%p188_p10)   ;;  %s216_s13 = sadd.s32 (!%p188_p10), %s3725_s18, %s2616_s10  ;;  %3035 = vmatprep.subr.bf16.mxu1 (!%p188_p10), %v3557_v0  ;;  %v3560_v3 = vld [vmem:[%s4610_s1 + $0x108] sm:$0xff] (!%p188_p10)   ;;  %v3562_v5 = vld [vmem:[%s4610_s1 + $0x110] sm:$0xff] (!%p188_p10)   ;;  %vm1645_vm1 = vcmask (!%p188_p10), 1046532  }
  0x12   : > { %s3840_s7 = scalar_select %p129_p11, %s3721_s17, %s131_s5  }
  0x13   : > { %p217_p12 = scmp.lt.s32.totalorder (!%p188_p10), %s216_s13, 3  ;;  %3163 = vmatprep.subr.bf16.mxu0 (!%p188_p10), %v3558_v1  ;;  %3036 = vmatpush3.bf16.msra.mxu1 (!%p188_p10), %v3557_v0  ;;  %v3563_v6 = vld [vmem:[%s4610_s1 + $0xd8] sm:$0xff] (!%p188_p10)   ;;  %v3565_v8 = vld [vmem:[%s4610_s1 + $0xe0] sm:$0xff] (!%p188_p10)   ;;  %v3567_v10 = vld [vmem:[%s4610_s1 + $0xe8] sm:$0xff] (!%p188_p10)   ;;  %vm817_vm2 = vsmask.f32 (!%p188_p10), 3328 }
  0x14   : > { %3164 = vmatpush3.bf16.msra.mxu0 (!%p188_p10), %v3558_v1  ;;  %3037 = vmatprep.subr.bf16.mxu1 (!%p188_p10), %v3559_v2  ;;  %v3564_v7 = vld [vmem:[%s4610_s1 + $0x118] sm:$0xff] (!%p188_p10)   ;;  %v3566_v9 = vld [vmem:[%s4610_s1 + $0x120] sm:$0xff] (!%p188_p10)   ;;  %v3568_v14 = vld [vmem:[%s4610_s1 + $0x128] sm:$0xff] (!%p188_p10)   ;;  %vm818_vm3 = vsmask.f32 (!%p188_p10), 7440  ;;  %s2874_s23 = sshll.u32 (!%p188_p10), %s3725_s18, 4 }
  0x15   : > { %3165 = vmatprep.subr.bf16.mxu0 (!%p188_p10), %v3560_v3  ;;  %vm3899_vm4 = vmor (!%p188_p10), %vm1644_vm0, %vm1645_vm1  ;;  %v3569_v28 = vld [vmem:[%s4610_s1 + $0xf0] sm:$0xff] (!%p188_p10)   ;;  %v3571_v47 = vld [vmem:[%s4610_s1 + $0xf8] sm:$0xff] (!%p188_p10)   ;;  %s2870_s24 = sshll.u32 (!%p188_p10), %s3729_s19, 5  ;;  %s3743_s10 = smov (!%p188_p10), [#allocation2]  }
  0x16   : > { %v3570_v32 = vld [vmem:[%s4610_s1 + $0x130] sm:$0xff] (!%p188_p10)   ;;  %vm3913_vm5 = vmor (!%p188_p10), %vm817_vm2, %vm818_vm3  ;;  %v3572_v52 = vld [vmem:[%s4610_s1 + $0x138] sm:$0xff] (!%p188_p10)   ;;  %s2529_s27 = sadd.s32 (!%p188_p10), %s2874_s23, %s2870_s24  ;;  %s3651_s11 = sshll.u32 (!%p188_p10), %s3743_s10, 4  ;;  %s3652_s11 = int_to_ptr.vmem [resolvable:$false] %s3651_s11 }
  0x17   : > { %3038 = vmatpush3.bf16.msra.mxu1 (!%p188_p10), %v3559_v2  ;;  %v3575_v60 = vld [vmem:[%s4610_s1] sm:$0xff] (!%p188_p10)   ;;  %v3628_v37 = vld [vmem:[%s4610_s1 + $0x170] sm:$0xff] (!%p188_p10)   ;;  %s2871_s30 = sshll.u32 (!%p188_p10), %s2529_s27, 7 }
  0x18   : > { %s4637_s13 = smov (!%p217_p12, %s216_s13), 3  ;;  %3166 = vmatpush3.bf16.msra.mxu0 %v3560_v3  ;;  %3039 = vmatprep.subr.bf16.mxu1 %v3561_v4  ;;  %v3622_v27 = vld [vmem:[%s4610_s1 + $0x60] sm:$0xff]   ;;  %s4548_s6 = scalar_lea.hbm %s4613_s4, %s2871_s30 }
  0x19   : > { %3167 = vmatprep.subr.bf16.mxu0 %v3562_v5  ;;  %s3483_s14 = smul.u32 120, %s4637_s13 }
  0x1b   : > { %3040 = vmatpush3.bf16.msra.mxu1 %v3561_v4  ;;  %s3877_s8 = scalar_lea.vmem %s4609_s0, %s3483_s14 }
  0x1c   : > { %3168 = vmatpush3.bf16.msra.mxu0 %v3562_v5  ;;  %3041 = vmatprep.subr.bf16.mxu1 %v3563_v6  ;;  %v229_v11 = vld [vmem:[%s3877_s8 + $0xc] sm:$0xf]  ;;  %v230_v12 = vld [vmem:[%s3877_s8 + $0x10] sm:$0xf]  ;;  %v231_v13 = vld [vmem:[%s3877_s8 + $0x14] sm:$0x1] }
  0x1d   : > { %3169 = vmatprep.subr.bf16.mxu0 %v3564_v7  ;;  %v3888_v15 = vcombine.low %v229_v11, %v230_v12  ;;  %v845_v16 = vshrl.u32 %v229_v11, 16  ;;  %v848_v17 = vshll.u32 %v229_v11, 16  ;;  %v858_v18 = vshrl.u32 %v230_v12, 16  ;;  %v3891_v19 = vld [vmem:[%s3877_s8 + $0x18] sm:$0xf] }
  0x1e   : > { %v2767_v20 = vrot.slane %v229_v11, 9  ;;  %v1656_v21 = vrot.slane %v230_v12, 5  ;;  %v854_v24 = vshll.u32 %v230_v12, 16  ;;  %v3895_v26 = vld [vmem:[%s3877_s8 + $0x1c] sm:$0xf]  ;;  %v864_v30 = vshll.u32 %v231_v13, 16 }
  0x1f   : > { %3042 = vmatpush3.bf16.msra.mxu1 %v3563_v6  ;;  %3051 = vmatprep.mubr.bf16.mxu1 %v3888_v15  ;;  %v847_v22 = vrot.slane %v845_v16, 4  ;;  %v850_v23 = vrot.slane %v848_v17, 5  ;;  %v860_v25 = vrot.slane %v858_v18, 4  ;;  %v1659_v31 = vrot.slane %v231_v13, 5  ;;  %v3919_v40 = vld [vmem:[%s3877_s8 + $0x20] sm:$0x1] }
  0x20   : > { %3170 = vmatpush3.bf16.msra.mxu0 %v3564_v7  ;;  %3043 = vmatprep.subr.bf16.mxu1 %v3565_v8  ;;  %v1658_v29 = vrot.slane %v1656_v21, 4  ;;  %v856_v34 = vrot.slane %v854_v24, 5  ;;  %v869_v35 = vshrl.u32 %v3891_v19, 16  ;;  %v872_v36 = vshll.u32 %v3891_v19, 16  ;;  %v3943_v62 = vld [vmem:[%s3877_s8 + $0x24] sm:$0xf] }
  0x21   : > { %3171 = vmatprep.subr.bf16.mxu0 %v3566_v9  ;;  %v851_v33 = vor.u32 %v850_v23, %v847_v22  ;;  %v866_v38 = vrot.slane %v864_v30, 5  ;;  %v882_v39 = vshrl.u32 %v3895_v26, 16  ;;  %v878_v41 = vshll.u32 %v3895_v26, 16  ;;  %v3946_v63 = vld [vmem:[%s3877_s8 + $0x28] sm:$0xf]  ;;  %v3576_v7 = vld [vmem:[%s4610_s1 + $0x1c0] sm:$0xff]  }
  0x22   : > { %v1657_v42 = vsel %vm3899_vm4, %v2767_v20, %v1656_v21  ;;  %v861_v44 = vor.u32 %v860_v25, %v856_v34  ;;  %v871_v45 = vrot.slane %v869_v35, 4  ;;  %v874_v46 = vrot.slane %v872_v36, 5  ;;  %v3956_v4 = vld [vmem:[%s3877_s8 + $0x2c] sm:$0x1]  ;;  %v3959_v5 = vld [vmem:[%s3877_s8 + $0x30] sm:$0xf] }
  0x23   : > { %3044 = vmatpush3.bf16.msra.mxu1 %v3565_v8  ;;  %v852_v43 = vrot.slane %v851_v33, 4  ;;  %v880_v48 = vrot.slane %v878_v41, 5  ;;  %v884_v49 = vrot.slane %v882_v39, 4  ;;  %v888_v50 = vshll.u32 %v3919_v40, 16  ;;  %v3970_v11 = vld [vmem:[%s3877_s8 + $0x34] sm:$0xf] }
  0x24   : > { %3172 = vmatpush3.bf16.msra.mxu0 %v3566_v9  ;;  %3045 = vmatprep.subr.bf16.mxu1 %v3567_v10  ;;  %v1660_v51 = vsel %vm3899_vm4, %v1658_v29, %v1659_v31  ;;  %v862_v54 = vrot.slane %v861_v44, 4  ;;  %v875_v55 = vor.u32 %v874_v46, %v871_v45  ;;  %v3952_v1 = vcombine.low %v3891_v19, %v3895_v26  ;;  %v3577_v13 = vld [vmem:[%s4610_s1 + $0x8] sm:$0xff]   ;;  %v3989_v24 = vld [vmem:[%s3877_s8 + $0x38] sm:$0x1] }
  0x25   : > { %3173 = vmatprep.subr.bf16.mxu0 %v3568_v14  ;;  %v857_v53 = vsel %vm3913_vm5, %v852_v43, %v856_v34  ;;  %v3935_v56 = vcombine.low %v1657_v42, %v1660_v51  ;;  %v885_v57 = vor.u32 %v884_v49, %v880_v48  ;;  %v890_v58 = vrot.slane %v888_v50, 5  ;;  %v3578_v20 = vld [vmem:[%s4610_s1 + $0x1c8] sm:$0xff]   ;;  %v3581_v42 = vld [vmem:[%s4610_s1 + $0x10] sm:$0xff]  }
  0x26   : > { %v867_v59 = vsel %vm3913_vm5, %v862_v54, %v866_v38  ;;  %v876_v61 = vrot.slane %v875_v55, 4  ;;  %v893_v3 = vshrl.u32 %v3943_v62, 16  ;;  %v896_v8 = vshll.u32 %v3943_v62, 16  ;;  %v4021_v54 = vld [vmem:[%s3877_s8 + $0x44] sm:$0x1] }
  0x27   : > { %3046 = vmatpush3.bf16.msra.mxu1 %v3567_v10  ;;  %v3948_v0 = vcombine.low %v857_v53, %v867_v59  ;;  %v886_v2 = vrot.slane %v885_v57, 4  ;;  %v906_v9 = vshrl.u32 %v3946_v63, 16  ;;  %v902_v10 = vshll.u32 %v3946_v63, 16  ;;  %v4024_v55 = vld [vmem:[%s3877_s8 + $0x48] sm:$0xf]  ;;  %v3583_v59 = vld [vmem:[%s4610_s1 + $0x18] sm:$0xff]  }
  0x28   : > { %3174 = vmatpush3.bf16.msra.mxu0 %v3568_v14  ;;  %3047 = vmatprep.subr.bf16.mxu1 %v3569_v28  ;;  %v881_v6 = vsel %vm3913_vm5, %v876_v61, %v880_v48  ;;  %v3980_v14 = vcombine.low %v3943_v62, %v3946_v63  ;;  %v895_v16 = vrot.slane %v893_v3, 4  ;;  %v912_v17 = vshll.u32 %v3956_v4, 16  ;;  %v4009_v48 = vld [vmem:[%s3877_s8 + $0x40] sm:$0xf] }
  0x29   : > { %3175 = vmatprep.subr.bf16.mxu0 %v3570_v32  ;;  %3179 = vmatprep.mubr.bf16.mxu0 %v3948_v0  ;;  %v891_v12 = vsel %vm3913_vm5, %v886_v2, %v890_v58  ;;  %v898_v21 = vrot.slane %v896_v8, 5  ;;  %v904_v22 = vrot.slane %v902_v10, 5  ;;  %v908_v23 = vrot.slane %v906_v9, 4  ;;  %v4037_v2 = vld [vmem:[%s3877_s8 + $0x4c] sm:$0xf] }
  0x2a   : > { %v3983_v18 = vcombine.low %v881_v6, %v891_v12  ;;  %v914_v25 = vrot.slane %v912_v17, 5  ;;  %v920_v29 = vshll.u32 %v3959_v5, 16  ;;  %v930_v30 = vshrl.u32 %v3970_v11, 16  ;;  %v3584_v17 = vld [vmem:[%s4610_s1 + $0x1d8] sm:$0xff]  }
  0x2b   : > { %3048 = vmatpush3.bf16.msra.mxu1 %v3569_v28  ;;  %v917_v28 = vshrl.u32 %v3959_v5, 16  ;;  %v899_v31 = vor.u32 %v898_v21, %v895_v16  ;;  %v926_v33 = vshll.u32 %v3970_v11, 16  ;;  %v936_v34 = vshll.u32 %v3989_v24, 16  ;;  %v4046_v16 = vld [vmem:[%s3877_s8 + $0x50] sm:$0x1] }
  0x2c   : > { %3176 = vmatpush3.bf16.msra.mxu0 %v3570_v32  ;;  %3049 = vmatprep.subr.bf16.mxu1 %v3571_v47  ;;  %v909_v32 = vor.u32 %v908_v23, %v904_v22  ;;  %v922_v36 = vrot.slane %v920_v29, 5  ;;  %v932_v38 = vrot.slane %v930_v30, 4  ;;  %v4003_v45 = vcombine.low %v3959_v5, %v3970_v11 }
  0x2d   : > { %3177 = vmatprep.subr.bf16.mxu0 %v3572_v52  ;;  %v919_v35 = vrot.slane %v917_v28, 4  ;;  %v900_v39 = vrot.slane %v899_v31, 4  ;;  %v928_v43 = vrot.slane %v926_v33, 5  ;;  %v938_v44 = vrot.slane %v936_v34, 5 }
  0x2e   : > { %v910_v41 = vrot.slane %v909_v32, 4  ;;  %v954_v6 = vshrl.u32 %v4009_v48, 16  ;;  %v950_v8 = vshll.u32 %v4009_v48, 16  ;;  %v960_v12 = vshll.u32 %v4021_v54, 16 }
  0x2f   : > { %3050 = vmatpush3.bf16.msra.mxu1 %v3571_v47  ;;  %v923_v46 = vor.u32 %v922_v36, %v919_v35  ;;  %v4006_v47 = vld [vmem:[%s3877_s8 + $0x3c] sm:$0xf]  ;;  %v905_v49 = vsel %vm3913_vm5, %v900_v39, %v904_v22  ;;  %v933_v51 = vor.u32 %v932_v38, %v928_v43  ;;  %v965_v22 = vshrl.u32 %v4024_v55, 16  ;;  %v3587_v35 = vld [vmem:[%s4610_s1 + $0x20] sm:$0xff]  }
  0x30   : > { %3178 = vmatpush3.bf16.msra.mxu0 %v3572_v52  ;;  %3067 = vmatprep.subr.bf16.mxu1 %v3575_v60  ;;  %v915_v50 = vsel %vm3913_vm5, %v910_v41, %v914_v25  ;;  %v3582_v52 = vld [vmem:[%s4610_s1 + $0x1d0] sm:$0xff]   ;;  %v941_v53 = vshrl.u32 %v4006_v47, 16  ;;  %v944_v61 = vshll.u32 %v4006_v47, 16  ;;  %v956_v21 = vrot.slane %v954_v6, 4  ;;  %v3589_v6 = vld [vmem:[%s4610_s1 + $0x28] sm:$0xff]  }
  0x31   : > { %3195 = vmatprep.subr.bf16.mxu0 %v3576_v7  ;;  %v4026_v57 = vcombine.low %v905_v49, %v915_v50  ;;  %v924_v58 = vrot.slane %v923_v46, 4  ;;  %v934_v3 = vrot.slane %v933_v51, 4  ;;  %v962_v28 = vrot.slane %v960_v12, 5  ;;  %v4074_v46 = vld [vmem:[%s3877_s8 + $0x54] sm:$0xf] }
  0x32   : > { %3052 = vmatmul.mubr.bf16.vlgmr.msra.gmra.mrb[0].mxu1 %v3952_v1  ;;  %v946_v10 = vrot.slane %v944_v61, 5  ;;  %v968_v29 = vshll.u32 %v4024_v55, 16  ;;  %v978_v31 = vshrl.u32 %v4037_v2, 16  ;;  %v967_v32 = vrot.slane %v965_v22, 4 }
  0x33   : > { %3180 = vmatmul.mubr.bf16.vlgmr.msra.gmra.mrb[0].mxu0 %v3983_v18  ;;  %3068 = vmatpush3.bf16.msra.mxu1 %v3575_v60  ;;  %v4033_v60 = vcombine.low %v4006_v47, %v4009_v48  ;;  %v929_v9 = vsel %vm3913_vm5, %v924_v58, %v928_v43  ;;  %v974_v33 = vshll.u32 %v4037_v2, 16  ;;  %v984_v38 = vshll.u32 %v4046_v16, 16  ;;  %v4083_v58 = vld [vmem:[%s3877_s8 + $0x5c] sm:$0x1] }
  0x34   : > { %3196 = vmatpush3.bf16.msra.mxu0 %v3576_v7  ;;  %3069 = vmatprep.subr.bf16.mxu1 %v3577_v13  ;;  %v943_v7 = vrot.slane %v941_v53, 4  ;;  %v970_v36 = vrot.slane %v968_v29, 5  ;;  %v4068_v41 = vcombine.low %v4024_v55, %v4037_v2  ;;  %v980_v43 = vrot.slane %v978_v31, 4 }
  0x35   : > { %3197 = vmatprep.subr.bf16.mxu0 %v3578_v20  ;;  %3055 = vmatprep.mubr.bf16.mxu1 %v3980_v14  ;;  %v986_v51 = vrot.slane %v984_v38, 5  ;;  %v989_v53 = vshrl.u32 %v4074_v46, 16  ;;  %v1008_v29 = vshll.u32 %v4083_v58, 16 }
  0x36   : > { %3183 = vmatprep.mubr.bf16.mxu0 %v4026_v57  ;;  %v947_v25 = vor.u32 %v946_v10, %v943_v7  ;;  %v971_v50 = vor.u32 %v970_v36, %v967_v32  ;;  %v4099_v10 = vld [vmem:[%s3877_s8 + $0x64] sm:$0xf] }
  0x37   : > { %3070 = vmatpush3.bf16.msra.mxu1 %v3577_v13  ;;  %v939_v13 = vsel %vm3913_vm5, %v934_v3, %v938_v44  ;;  %v3588_v44 = vld [vmem:[%s4610_s1 + $0x1e0] sm:$0xff]   ;;  %v1010_v38 = vrot.slane %v1008_v29, 5 }
  0x38   : > { %3198 = vmatpush3.bf16.msra.mxu0 %v3578_v20  ;;  %3071 = vmatprep.subr.bf16.mxu1 %v3581_v42  ;;  %v952_v20 = vrot.slane %v950_v8, 5  ;;  %v4055_v23 = vcombine.low %v929_v9, %v939_v13  ;;  %v948_v34 = vrot.slane %v947_v25, 4  ;;  %v992_v8 = vshll.u32 %v4074_v46, 16  ;;  %v4096_v9 = vld [vmem:[%s3877_s8 + $0x60] sm:$0xf]  ;;  %v3590_v13 = vld [vmem:[%s4610_s1 + $0x1e8] sm:$0xff]  }
  0x39   : > { %3199 = vmatprep.subr.bf16.mxu0 %v3582_v52  ;;  %v1013_v32 = vshrl.u32 %v4096_v9, 16 }
  0x3a   : > { %3056 = vmatmul.mubr.bf16.gmra.mrb[4].mxu1 %v4003_v45  ;;  %v957_v30 = vor.u32 %v956_v21, %v952_v20  ;;  %v953_v49 = vsel %vm3913_vm5, %v948_v34, %v952_v20  ;;  %v991_v21 = vrot.slane %v989_v53, 4  ;;  %v994_v25 = vrot.slane %v992_v8, 5 }
  0x3b   : > { %3072 = vmatpush3.bf16.msra.mxu1 %v3581_v42  ;;  %3059 = vmatprep.mubr.bf16.mxu1 %v4033_v60  ;;  %v976_v42 = vrot.slane %v974_v33, 5  ;;  %v4115_v33 = vld [vmem:[%s3877_s8 + $0x68] sm:$0x1]  ;;  %v1022_v53 = vshll.u32 %v4099_v10, 16  ;;  %v4135_v8 = vcombine.low %v4096_v9, %v4099_v10 }
  0x3c   : > { %3184 = vmatmul.mubr.bf16.gmra.mrb[4].mxu0 %v4055_v23  ;;  %3073 = vmatprep.subr.bf16.mxu1 %v3583_v59  ;;  %v958_v39 = vrot.slane %v957_v30, 4  ;;  %v995_v34 = vor.u32 %v994_v25, %v991_v21 }
  0x3d   : > { %3200 = vmatpush3.bf16.msra.mxu0 %v3582_v52  ;;  %v4079_v52 = vld [vmem:[%s3877_s8 + $0x58] sm:$0xf]  ;;  %v981_v3 = vor.u32 %v980_v43, %v976_v42  ;;  %v1026_v43 = vshrl.u32 %v4099_v10, 16  ;;  %v1024_v25 = vrot.slane %v1022_v53, 5  ;;  %v4179_v53 = vld [vmem:[%s3877_s8 + $0x6c] sm:$0xf] }
  0x3e   : > { %3201 = vmatprep.subr.bf16.mxu0 %v3584_v17  ;;  %v963_v61 = vsel %vm3913_vm5, %v958_v39, %v962_v28  ;;  %v4092_v7 = vcombine.low %v4074_v46, %v4079_v52  ;;  %v1002_v20 = vshrl.u32 %v4079_v52, 16  ;;  %v998_v28 = vshll.u32 %v4079_v52, 16 }
  0x3f   : > { %3074 = vmatpush3.bf16.msra.mxu1 %v3583_v59  ;;  %v4101_v12 = vcombine.low %v953_v49, %v963_v61  ;;  %v972_v59 = vrot.slane %v971_v50, 4  ;;  %v982_v22 = vrot.slane %v981_v3, 4  ;;  %v3593_v49 = vld [vmem:[%s4610_s1 + $0x30] sm:$0xff]   ;;  %v1015_v50 = vrot.slane %v1013_v32, 4 }
  0x40   : > { %3075 = vmatprep.subr.bf16.mxu1 %v3587_v35  ;;  %v1004_v31 = vrot.slane %v1002_v20, 4  ;;  %v1000_v36 = vrot.slane %v998_v28, 5  ;;  %v1032_v61 = vshll.u32 %v4115_v33, 16  ;;  %v3594_v3 = vld [vmem:[%s4610_s1 + $0x1f0] sm:$0xff]   ;;  %v4138_v20 = vld [vmem:[%s3877_s8] sm:$0xf] }
  0x41   : > { %3202 = vmatpush3.bf16.msra.mxu0 %v3584_v17  ;;  %3187 = vmatprep.mubr.bf16.mxu0 %v4101_v12  ;;  %v977_v30 = vsel %vm3913_vm5, %v972_v59, %v976_v42  ;;  %v987_v17 = vsel %vm3913_vm5, %v982_v22, %v986_v51  ;;  %v1016_v42 = vshll.u32 %v4096_v9, 16  ;;  %v4143_v28 = vld [vmem:[%s3877_s8 + $0x4] sm:$0xf] }
  0x42   : > { %3060 = vmatmul.mubr.bf16.gmra.mrb[8].mxu1 %v4068_v41  ;;  %3203 = vmatprep.subr.bf16.mxu0 %v3588_v44  ;;  %v4119_v39 = vcombine.low %v977_v30, %v987_v17  ;;  %v1005_v51 = vor.u32 %v1004_v31, %v1000_v36  ;;  %v3595_v30 = vld [vmem:[%s4610_s1 + $0x38] sm:$0xff]   ;;  %v2650_v31 = vcombine.low %v4138_v20, %v4143_v28  ;;  %v1034_v17 = vrot.slane %v1032_v61, 5  ;;  %v3601_v61 = vld [vmem:[%s4610_s1 + $0x88] sm:$0xff]  }
  0x43   : > { %3076 = vmatpush3.bf16.msra.mxu1 %v3587_v35  ;;  %3063 = vmatprep.mubr.bf16.mxu1 %v4092_v7  ;;  %v996_v35 = vrot.slane %v995_v34, 4  ;;  %v1018_v59 = vrot.slane %v1016_v42, 5  ;;  %v3596_v42 = vld [vmem:[%s4610_s1 + $0x1f8] sm:$0xff]  }
  0x44   : > { %3077 = vmatprep.subr.bf16.mxu1 %v3589_v6  ;;  %3188 = vmatmul.mubr.bf16.gmra.mrb[8].mxu0 %v4119_v39  ;;  %v1006_v22 = vrot.slane %v1005_v51, 4  ;;  %v3600_v51 = vld [vmem:[%s4610_s1 + $0x188] sm:$0xff]  }
  0x45   : > { %3204 = vmatpush3.bf16.msra.mxu0 %v3588_v44  ;;  %v1028_v44 = vrot.slane %v1026_v43, 4  ;;  %v1001_v21 = vsel %vm3913_vm5, %v996_v35, %v1000_v36  ;;  %v1019_v29 = vor.u32 %v1018_v59, %v1015_v50  ;;  %v3599_v50 = vld [vmem:[%s4610_s1 + $0x80] sm:$0xff]   ;;  %v4614_v59 = vrot.slane %v4143_v28, 5 }
  0x46   : > { %3205 = vmatprep.subr.bf16.mxu0 %v3590_v13 }
  0x47   : > { %3078 = vmatpush3.bf16.msra.mxu1 %v3589_v6  ;;  %v1011_v6 = vsel %vm3913_vm5, %v1006_v22, %v1010_v38  ;;  %v1029_v32 = vor.u32 %v1028_v44, %v1024_v25  ;;  %v1020_v36 = vrot.slane %v1019_v29, 4  ;;  %v4189_v44 = vld [vmem:[%s3877_s8 + $0x70] sm:$0xf]  ;;  %v2768_v22 = vrot.slane %v3891_v19, 9 }
  0x48   : > { %3079 = vmatprep.subr.bf16.mxu1 %v3593_v49  ;;  %v4152_v34 = vcombine.low %v1001_v21, %v1011_v6  ;;  %v1037_v21 = vshrl.u32 %v4179_v53, 16  ;;  %v3603_v29 = vld [vmem:[%s4610_s1 + $0x90] sm:$0xff]   ;;  %v1663_v19 = vrot.slane %v3895_v26, 5  ;;  %v2769_v6 = vrot.slane %v3943_v62, 9 }
  0x49   : > { %3206 = vmatpush3.bf16.msra.mxu0 %v3590_v13  ;;  %v1030_v43 = vrot.slane %v1029_v32, 4  ;;  %v3598_v13 = vld [vmem:[%s4610_s1 + $0x180] sm:$0xff]   ;;  %v1025_v38 = vsel %vm3913_vm5, %v1020_v36, %v1024_v25  ;;  %v1040_v25 = vshll.u32 %v4179_v53, 16  ;;  %v1050_v32 = vshrl.u32 %v4189_v44, 16 }
  0x4a   : > { %3064 = vmatmul.mubr.bf16.gmra.mrb[12].mxu1 %v4135_v8  ;;  %3207 = vmatprep.subr.bf16.mxu0 %v3594_v3  ;;  %v3606_v36 = vld [vmem:[%s4610_s1 + $0x1a0] sm:$0xff]  }
  0x4b   : > { %3080 = vmatpush3.bf16.msra.mxu1 %v3593_v49  ;;  %3083 = vmatprep.mubr.bf16.mxu1 %v2650_v31  ;;  %v1035_v35 = vsel %vm3913_vm5, %v1030_v43, %v1034_v17  ;;  %v1046_v31 = vshll.u32 %v4189_v44, 16  ;;  %v4211_v17 = vrot.slane %v4614_v59, 4  ;;  %v1664_v43 = vsel %vm3899_vm4, %v2768_v22, %v1663_v19  ;;  %v4232_v22 = vld [vmem:[%s3877_s8 + $0x8] sm:$0x1] }
  0x4c   : > { %3191 = vmatprep.mubr.bf16.mxu0 %v4152_v34  ;;  %3081 = vmatprep.subr.bf16.mxu1 %v3595_v30  ;;  %v4169_v49 = vcombine.low %v1025_v38, %v1035_v35  ;;  %v1665_v38 = vrot.slane %v1663_v19, 4  ;;  %v1670_v19 = vrot.slane %v3946_v63, 5  ;;  %v3607_v63 = vld [vmem:[%s4610_s1 + $0xa0] sm:$0xff]  }
  0x4d   : > { %3208 = vmatpush3.bf16.msra.mxu0 %v3594_v3  ;;  %v3602_v3 = vld [vmem:[%s4610_s1 + $0x190] sm:$0xff]   ;;  %v4224_v35 = vrot.slane %v1046_v31, 5  ;;  %v1673_v31 = vrot.slane %v3956_v4, 5 }
  0x4e   : > { %3209 = vmatprep.subr.bf16.mxu0 %v3596_v42  ;;  %3192 = vmatmul.mubr.bf16.gmra.mrb[12].mxu0 %v4169_v49  ;;  %v1672_v59 = vrot.slane %v1670_v19, 4 }
  0x4f   : > { %3082 = vmatpush3.bf16.msra.mxu1 %v3595_v30  ;;  %3211 = vmatprep.mubr.bf16.mxu0 %v3983_v18  ;;  %v3604_v30 = vld [vmem:[%s4610_s1 + $0x198] sm:$0xff]  }
  0x50   : > { %3099 = vmatprep.subr.bf16.mxu1 %v3598_v13 }
  0x51   : > { %3210 = vmatpush3.bf16.msra.mxu0 %v3596_v42  ;;  %v1039_v42 = vrot.slane %v1037_v21, 4  ;;  %v1052_v21 = vrot.slane %v1050_v32, 4  ;;  %v1671_v32 = vsel %vm3899_vm4, %v2769_v6, %v1670_v19  ;;  %v1674_v6 = vsel %vm3899_vm4, %v1672_v59, %v1673_v31 }
  0x52   : > { %3084 = vmatmul.mubr.bf16.vlgmr.msra.gmra.mrb[0].mxu1 %v3888_v15  ;;  %3227 = vmatprep.subr.bf16.mxu0 %v3599_v50  ;;  %v4192_v15 = vld [vmem:[%s3877_s8 + $0x74] sm:$0x1]  ;;  %s212_s8 = sand.u32 1, %s3717_s16  }
  0x53   : > { %3100 = vmatpush3.bf16.msra.mxu1 %v3598_v13  ;;  %3087 = vmatprep.mubr.bf16.mxu1 %v3952_v1  ;;  %v1056_v26 = vshll.u32 %v4192_v15, 16  ;;  %v1042_v13 = vrot.slane %v1040_v25, 5  ;;  %v1053_v4 = vor.u32 %v1052_v21, %v4224_v35  ;;  %s2615_s12 = sshll.u32 %s212_s8, 7  ;;  %s4557_s13 = scalar_lea.sflag [#allocation3], %s212_s8 }
  0x54   : > { %3101 = vmatprep.subr.bf16.mxu1 %v3600_v51  ;;  %s4527_s14 = scalar_lea.vmem [#allocation2], %s2615_s12  ;;  %s3653_s12 = scalar_lea.vmem %s3652_s11, 4096 }
  0x55   : > { %v1043_v62 = vor.u32 %v1042_v13, %v1039_v42  ;;  %v1680_v42 = vrot.slane %v3989_v24, 5  ;;  %v1684_v13 = vrot.slane %v4009_v48, 5  ;;  %v4264_v24 = vcombine.low %v1671_v32, %v1674_v6  ;;  %s2532_s5 = sshll.u32 %s4527_s14, 4  ;;  %s4550_s5 = int_to_ptr.vmem [resolvable:$true] %s2532_s5 }
  0x56   : > { %3212 = vmatmul.mubr.bf16.vlgmr.msra.gmra.mrb[0].mxu0 %v4026_v57  ;;  %v1691_v32 = vrot.slane %v4037_v2, 5  ;;  %s3647_s9 = scalar_lea.vmem %s4550_s5, 2048  ;;  %p3654_p2 = scmp.lt.s32.totalorder %s4550_s5, %s3652_s11 }
  0x57   : > { %3102 = vmatpush3.bf16.msra.mxu1 %v3600_v51  ;;  %3228 = vmatpush3.bf16.msra.mxu0 %v3599_v50  ;;  %v3605_v50 = vld [vmem:[%s4610_s1 + $0x98] sm:$0xff]   ;;  %v1666_v51 = vrot.slane %v3919_v40, 5  ;;  %v1044_v59 = vrot.slane %v1043_v62, 4  ;;  %v1694_v62 = vrot.slane %v4046_v16, 5  ;;  %p3648_p13 = scmp.ne.s32.totalorder %s4550_s5, %s3647_s9  ;;  %p3655_p4 = scmp.lt.s32.totalorder %s3653_s12, %s3647_s9 }
  0x58   : > { %3103 = vmatprep.subr.bf16.mxu1 %v3602_v3  ;;  %3215 = vmatprep.mubr.bf16.mxu0 %v4055_v23  ;;  %v1693_v16 = vrot.slane %v1691_v32, 4 }
  0x59   : > { %3229 = vmatprep.subr.bf16.mxu0 %v3601_v61  ;;  %v1667_v25 = vsel %vm3899_vm4, %v1665_v38, %v1666_v51  ;;  %p3649_p0 = pnand %p3648_p13, %p3822_p3  ;;  %p3656_p5 = por %p3655_p4, %p3654_p2 }
  0x5a   : > { %3088 = vmatmul.mubr.bf16.gmra.mrb[4].mxu1 %v3980_v14  ;;  %v4238_v40 = vcombine.low %v1664_v43, %v1667_v25  ;;  %v1677_v43 = vrot.slane %v3970_v11, 5  ;;  %v1652_v11 = vrot.slane %v4232_v22, 5  ;;  %v2772_v25 = vrot.slane %v4024_v55, 9  ;;  %v3612_v55 = vld [vmem:[%s4610_s1 + $0x1b8] sm:$0xff]  }
  0x5b   : > { %3104 = vmatpush3.bf16.msra.mxu1 %v3602_v3  ;;  %3091 = vmatprep.mubr.bf16.mxu1 %v4003_v45  ;;  %v3608_v3 = vld [vmem:[%s4610_s1 + $0x1a8] sm:$0xff]   ;;  %v1695_v6 = vsel %vm3899_vm4, %v1693_v16, %v1694_v62  ;;  %p3650_p1 = pneg %p3649_p0 }
  0x5c   : > { %3105 = vmatprep.subr.bf16.mxu1 %v3604_v30  ;;  %3230 = vmatpush3.bf16.msra.mxu0 %v3601_v61  ;;  %v4241_v61 = vrot.slane %v1056_v26, 5  ;;  %v2771_v26 = vrot.slane %v4006_v47, 9  ;;  %v1679_v51 = vrot.slane %v1677_v43, 4  ;;  %v3609_v47 = vld [vmem:[%s4610_s1 + $0xa8] sm:$0xff]   ;;  %v1692_v2 = vsel %vm3899_vm4, %v2772_v25, %v1691_v32 }
  0x5d   : > { %3231 = vmatprep.subr.bf16.mxu0 %v3603_v29  ;;  %v1705_v25 = vrot.slane %v4099_v10, 5  ;;  %v3617_v10 = vld [vmem:[%s4610_s1 + $0x148] sm:$0xff]   ;;  %p3657_p6 = pnand %p3656_p5, %p3650_p1 }
  0x5e   : > { %3216 = vmatmul.mubr.bf16.gmra.mrb[4].mxu0 %v4101_v12  ;;  %v1685_v48 = vsel %vm3899_vm4, %v2771_v26, %v1684_v13  ;;  %v1681_v21 = vsel %vm3899_vm4, %v1679_v51, %v1680_v42  ;;  %v4622_v42 = vrot.slane %v4138_v20, 9  ;;  %v4318_v26 = vcombine.low %v1692_v2, %v1695_v6  ;;  %v3614_v51 = vld [vmem:[%s4610_s1 + $0x40] sm:$0xff]  }
  0x5f   : > { %3106 = vmatpush3.bf16.msra.mxu1 %v3604_v30  ;;  %3219 = vmatprep.mubr.bf16.mxu0 %v4119_v39  ;;  %v2770_v30 = vrot.slane %v3959_v5, 9  ;;  %v1687_v5 = vrot.slane %v4021_v54, 5  ;;  %v1686_v54 = vrot.slane %v1684_v13, 4 }
  0x60   : > { %3107 = vmatprep.subr.bf16.mxu1 %v3606_v36  ;;  %3232 = vmatpush3.bf16.msra.mxu0 %v3603_v29  ;;  %v3610_v29 = vld [vmem:[%s4610_s1 + $0x1b0] sm:$0xff]  }
  0x61   : > { %3233 = vmatprep.subr.bf16.mxu0 %v3605_v50  ;;  %v1678_v38 = vsel %vm3899_vm4, %v2770_v30, %v1677_v43  ;;  %v1688_v31 = vsel %vm3899_vm4, %v1686_v54, %v1687_v5  ;;  %v1701_v43 = vrot.slane %v4083_v58, 5  ;;  %v821_v5 = vshrl.u32 %v4138_v20, 16  ;;  %v3615_v54 = vld [vmem:[%s4610_s1 + $0x140] sm:$0xff]  }
  0x62   : > { %3092 = vmatmul.mubr.bf16.gmra.mrb[8].mxu1 %v4033_v60  ;;  %v4276_v19 = vcombine.low %v1678_v38, %v1681_v21  ;;  %v4282_v30 = vcombine.low %v1685_v48, %v1688_v31  ;;  %v2774_v48 = vrot.slane %v4096_v9, 9  ;;  %v830_v21 = vshll.u32 %v4143_v28, 16  ;;  %v3618_v31 = vld [vmem:[%s4610_s1 + $0x50] sm:$0xff]  }
  0x63   : > { %3108 = vmatpush3.bf16.msra.mxu1 %v3606_v36  ;;  %3095 = vmatprep.mubr.bf16.mxu1 %v4068_v41  ;;  %v1054_v36 = vrot.slane %v1053_v4, 4  ;;  %v1698_v4 = vrot.slane %v4079_v52, 5  ;;  %v1708_v9 = vrot.slane %v4115_v33, 5 }
  0x64   : > { %3109 = vmatprep.subr.bf16.mxu1 %v3608_v3  ;;  %3234 = vmatpush3.bf16.msra.mxu0 %v3605_v50  ;;  %v2773_v50 = vrot.slane %v4074_v46, 9  ;;  %v1049_v46 = vsel %vm3913_vm5, %v1044_v59, %v4224_v35  ;;  %v834_v59 = vshrl.u32 %v4143_v28, 16  ;;  %v1706_v62 = vsel %vm3899_vm4, %v2774_v48, %v1705_v25 }
  0x65   : > { %3235 = vmatprep.subr.bf16.mxu0 %v3607_v63  ;;  %v1059_v52 = vsel %vm3913_vm5, %v1054_v36, %v4241_v61  ;;  %v1653_v61 = vsel %vm3899_vm4, %v4211_v17, %v1652_v11  ;;  %v824_v11 = vshll.u32 %v4138_v20, 16  ;;  %v3616_v20 = vld [vmem:[%s4610_s1 + $0x48] sm:$0xff]  }
  0x66   : > { %3220 = vmatmul.mubr.bf16.gmra.mrb[8].mxu0 %v4152_v34  ;;  %v1699_v58 = vsel %vm3899_vm4, %v2773_v50, %v1698_v4  ;;  %v2757_v38 = vcombine.low %v1049_v46, %v1059_v52  ;;  %v836_v32 = vrot.slane %v834_v59, 4  ;;  %v1707_v50 = vrot.slane %v1705_v25, 4  ;;  %v3619_v52 = vld [vmem:[%s4610_s1 + $0x150] sm:$0xff]  }
  0x67   : > { %3110 = vmatpush3.bf16.msra.mxu1 %v3608_v3  ;;  %3223 = vmatprep.mubr.bf16.mxu0 %v4169_v49  ;;  %v1700_v3 = vrot.slane %v1698_v4, 4  ;;  %v4621_v49 = vrot.slane %v4143_v28, 5  ;;  %v826_v36 = vrot.slane %v824_v11, 5  ;;  %v2775_v28 = vrot.slane %v4179_v53, 9  ;;  %v3620_v4 = vld [vmem:[%s4610_s1 + $0x58] sm:$0xff]  }
  0x68   : > { %3111 = vmatprep.subr.bf16.mxu1 %v3610_v29  ;;  %3236 = vmatpush3.bf16.msra.mxu0 %v3607_v63  ;;  %v3611_v63 = vld [vmem:[%s4610_s1 + $0xb0] sm:$0xff]   ;;  %v1709_v33 = vsel %vm3899_vm4, %v1707_v50, %v1708_v9 }
  0x69   : > { %3237 = vmatprep.subr.bf16.mxu0 %v3609_v47  ;;  %v1650_v35 = vsel %vm3899_vm4, %v4622_v42, %v4621_v49  ;;  %v1702_v13 = vsel %vm3899_vm4, %v1700_v3, %v1701_v43  ;;  %v832_v43 = vrot.slane %v830_v21, 5 }
  0x6a   : > { %3096 = vmatmul.mubr.bf16.gmra.mrb[12].mxu1 %v4092_v7  ;;  %v4326_v17 = vcombine.low %v1699_v58, %v1702_v13 }
  0x6b   : > { %3112 = vmatpush3.bf16.msra.mxu1 %v3610_v29  ;;  %3115 = vmatprep.mubr.bf16.mxu1 %v3952_v1  ;;  %v2792_v29 = vcombine.low %v1650_v35, %v1653_v61  ;;  %v3613_v1 = vld [vmem:[%s4610_s1 + $0xb8] sm:$0xff]   ;;  %v837_v3 = vor.u32 %v836_v32, %v832_v43  ;;  %v3627_v61 = vld [vmem:[%s4610_s1 + $0x70] sm:$0xff]  }
  0x6c   : > { %3113 = vmatprep.subr.bf16.mxu1 %v3612_v55  ;;  %3238 = vmatpush3.bf16.msra.mxu0 %v3609_v47  ;;  %v823_v47 = vrot.slane %v821_v5, 4 }
  0x6d   : > { %3239 = vmatprep.subr.bf16.mxu0 %v3611_v63  ;;  %v838_v42 = vrot.slane %v837_v3, 4 }
  0x6e   : > { %3224 = vmatmul.mubr.bf16.gmra.mrb[12].mxu0 %v2757_v38  ;;  %v827_v58 = vor.u32 %v826_v36, %v823_v47  ;;  %v3629_v38 = vld [vmem:[%s4610_s1 + $0x78] sm:$0xff]  }
  0x6f   : > { %3114 = vmatpush3.bf16.msra.mxu1 %v3612_v55  ;;  %3243 = vmatprep.mubr.bf16.mxu0 %v2792_v29  ;;  %v4361_v55 = vcombine.low %v1706_v62, %v1709_v33 }
  0x70   : > { %3131 = vmatprep.subr.bf16.mxu1 %v3614_v51  ;;  %3240 = vmatpush3.bf16.msra.mxu0 %v3611_v63  ;;  %v840_v63 = vshll.u32 %v4232_v22, 16  ;;  %v828_v49 = vrot.slane %v827_v58, 4  ;;  %v3623_v22 = vld [vmem:[%s4610_s1 + $0x160] sm:$0xff]  }
  0x71   : > { %3241 = vmatprep.subr.bf16.mxu0 %v3613_v1 }
  0x72   : > { %3116 = vmatmul.mubr.bf16.vlgmr.msra.gmra.mrb[0].mxu1 %v3980_v14  ;;  %v1712_v14 = vrot.slane %v4189_v44, 5  ;;  %v842_v35 = vrot.slane %v840_v63, 5  ;;  %v833_v6 = vsel %vm3913_vm5, %v828_v49, %v832_v43 }
  0x73   : > { %3132 = vmatpush3.bf16.msra.mxu1 %v3614_v51  ;;  %3119 = vmatprep.mubr.bf16.mxu1 %v4003_v45  ;;  %v1715_v45 = vrot.slane %v4192_v15, 5  ;;  %v3632_v51 = vld [vmem:[%s4610_s1 + $0x208] sm:$0xff]  }
  0x74   : > { %3133 = vmatprep.subr.bf16.mxu1 %v3616_v20  ;;  %3242 = vmatpush3.bf16.msra.mxu0 %v3613_v1  ;;  %v4365_v2 = vsel %vm3899_vm4, %v2775_v28, %v1712_v14  ;;  %v1714_v16 = vrot.slane %v1712_v14, 4  ;;  %v843_v13 = vsel %vm3913_vm5, %v838_v42, %v842_v35 }
  0x75   : > { %3259 = vmatprep.subr.bf16.mxu0 %v3615_v54  ;;  %v2700_v5 = vcombine.low %v833_v6, %v843_v13 }
  0x76   : > { %v4370_v15 = vsel %vm3899_vm4, %v1714_v16, %v1715_v45 }
  0x77   : > { %3134 = vmatpush3.bf16.msra.mxu1 %v3616_v20  ;;  %3244 = vmatmul.mubr.bf16.vlgmr.msra.gmra.mrb[0].mxu0 %v3935_v56  ;;  %v2849_v46 = vcombine.low %v4365_v2, %v4370_v15 }
  0x78   : > { %3135 = vmatprep.subr.bf16.mxu1 %v3618_v31  ;;  %3260 = vmatpush3.bf16.msra.mxu0 %v3615_v54 }
  0x79   : > { %3247 = vmatprep.mubr.bf16.mxu0 %v4238_v40  ;;  %3261 = vmatprep.subr.bf16.mxu0 %v3617_v10 }
  0x7a   : > { %3120 = vmatmul.mubr.bf16.gmra.mrb[4].mxu1 %v4033_v60  ;;  %v3621_v60 = vld [vmem:[%s4610_s1 + $0x158] sm:$0xff]  }
  0x7b   : > { %3136 = vmatpush3.bf16.msra.mxu1 %v3618_v31  ;;  %3123 = vmatprep.mubr.bf16.mxu1 %v4068_v41  ;;  %v3624_v41 = vld [vmem:[%s4610_s1 + $0x68] sm:$0xff]  }
  0x7c   : > { %3137 = vmatprep.subr.bf16.mxu1 %v3620_v4  ;;  %3262 = vmatpush3.bf16.msra.mxu0 %v3617_v10  ;;  %v4503_v10 = vld [vmem:[%s4611_s2] ss:$0 sm:$0xff] }
  0x7d   : > { %3263 = vmatprep.subr.bf16.mxu0 %v3619_v52 }
  0x7f   : > { %3138 = vmatpush3.bf16.msra.mxu1 %v3620_v4  ;;  %3248 = vmatmul.mubr.bf16.gmra.mrb[4].mxu0 %v4264_v24 }
  0x80   : > { %3139 = vmatprep.subr.bf16.mxu1 %v3622_v27  ;;  %3264 = vmatpush3.bf16.msra.mxu0 %v3619_v52 }
  0x81   : > { %3251 = vmatprep.mubr.bf16.mxu0 %v4276_v19  ;;  %3265 = vmatprep.subr.bf16.mxu0 %v3621_v60 }
  0x82   : > { %3124 = vmatmul.mubr.bf16.gmra.mrb[8].mxu1 %v4092_v7  ;;  %v3625_v7 = vld [vmem:[%s4610_s1 + $0x168] sm:$0xff]  }
  0x83   : > { %3140 = vmatpush3.bf16.msra.mxu1 %v3622_v27  ;;  %3127 = vmatprep.mubr.bf16.mxu1 %v4135_v8  ;;  %v2675_v8 = vcombine.low %v4179_v53, %v4189_v44  ;;  %v3630_v53 = vld [vmem:[%s4610_s1 + $0x178] sm:$0xff]   ;;  %v3631_v44 = vld [vmem:[%s4610_s1 + $0x200] sm:$0xff]  }
  0x84   : > { %3141 = vmatprep.subr.bf16.mxu1 %v3624_v41  ;;  %3266 = vmatpush3.bf16.msra.mxu0 %v3621_v60 }
  0x85   : > { %3267 = vmatprep.subr.bf16.mxu0 %v3623_v22 }
  0x87   : > { %3142 = vmatpush3.bf16.msra.mxu1 %v3624_v41  ;;  %3252 = vmatmul.mubr.bf16.gmra.mrb[8].mxu0 %v4282_v30 }
  0x88   : > { %3143 = vmatprep.subr.bf16.mxu1 %v3627_v61  ;;  %3268 = vmatpush3.bf16.msra.mxu0 %v3623_v22 }
  0x89   : > { %3255 = vmatprep.mubr.bf16.mxu0 %v4318_v26  ;;  %3269 = vmatprep.subr.bf16.mxu0 %v3625_v7 }
  0x8a   : > { %3128 = vmatmul.mubr.bf16.gmra.mrb[12].mxu1 %v2675_v8 }
  0x8b   : > { %3144 = vmatpush3.bf16.msra.mxu1 %v3627_v61  ;;  %3147 = vmatprep.mubr.bf16.mxu1 %v2700_v5 }
  0x8c   : > { %3145 = vmatprep.subr.bf16.mxu1 %v3629_v38  ;;  %3270 = vmatpush3.bf16.msra.mxu0 %v3625_v7 }
  0x8d   : > { %3271 = vmatprep.subr.bf16.mxu0 %v3628_v37 }
  0x8f   : > { %3146 = vmatpush3.bf16.msra.mxu1 %v3629_v38  ;;  %3256 = vmatmul.mubr.bf16.gmra.mrb[12].mxu0 %v4326_v17 }
  0x90   : > { %3272 = vmatpush3.bf16.msra.mxu0 %v3628_v37  ;;  %3275 = vmatprep.mubr.bf16.mxu0 %v3935_v56  ;;  %v3633_v56 = vld [vmem:[%s4610_s1 + $0x210] sm:$0xff]  }
  0x91   : > { %3273 = vmatprep.subr.bf16.mxu0 %v3630_v53 }
  0x92   : > { %3148 = vmatmul.mubr.bf16.vlgmr.msra.gmra.mrb[0].mxu1 %v3948_v0  ;;  %v3634_v0 = vld [vmem:[%s4610_s1 + $0x218] sm:$0xff]  }
  0x93   : > { %3151 = vmatprep.mubr.bf16.mxu1 %v3983_v18  ;;  %v3635_v18 = vld [vmem:[%s4610_s1 + $0x220] sm:$0xff]  }
  0x94   : > { %3274 = vmatpush3.bf16.msra.mxu0 %v3630_v53 }
  0x95   : > { %3291 = vmatprep.subr.bf16.mxu0 %v3631_v44 }
  0x97   : > { %3276 = vmatmul.mubr.bf16.vlgmr.msra.gmra.mrb[0].mxu0 %v4238_v40 }
  0x98   : > { %3292 = vmatpush3.bf16.msra.mxu0 %v3631_v44  ;;  %3279 = vmatprep.mubr.bf16.mxu0 %v4264_v24 }
  0x99   : > { %3293 = vmatprep.subr.bf16.mxu0 %v3632_v51 }
  0x9a   : > { %3152 = vmatmul.mubr.bf16.gmra.mrb[4].mxu1 %v4026_v57  ;;  %v3636_v57 = vld [vmem:[%s4610_s1 + $0x228] sm:$0xff]  }
  0x9b   : > { %3155 = vmatprep.mubr.bf16.mxu1 %v4055_v23  ;;  %v3637_v23 = vld [vmem:[%s4610_s1 + $0x230] sm:$0xff]  }
  0x9c   : > { %3294 = vmatpush3.bf16.msra.mxu0 %v3632_v51 }
  0x9d   : > { %3295 = vmatprep.subr.bf16.mxu0 %v3633_v56 }
  0x9f   : > { %3280 = vmatmul.mubr.bf16.gmra.mrb[4].mxu0 %v4276_v19 }
  0xa0   : > { %3296 = vmatpush3.bf16.msra.mxu0 %v3633_v56  ;;  %3283 = vmatprep.mubr.bf16.mxu0 %v4282_v30 }
  0xa1   : > { %3297 = vmatprep.subr.bf16.mxu0 %v3634_v0 }
  0xa2   : > { %3156 = vmatmul.mubr.bf16.gmra.mrb[8].mxu1 %v4101_v12  ;;  %v3638_v12 = vld [vmem:[%s4610_s1 + $0x238] sm:$0xff]  }
  0xa3   : > { %3159 = vmatprep.mubr.bf16.mxu1 %v4119_v39  ;;  %v3639_v39 = vld [vmem:[%s4612_s3] sm:$0xff]  }
  0xa4   : > { %3298 = vmatpush3.bf16.msra.mxu0 %v3634_v0  ;;  %3323 = vmatprep.subr.bf16.mxu1 %v3639_v39 }
  0xa5   : > { %3299 = vmatprep.subr.bf16.mxu0 %v3635_v18  ;;  %3324 = vmatpush3.bf16.msra.mxu1 %v3639_v39 }
  0xa7   : > { %3284 = vmatmul.mubr.bf16.gmra.mrb[8].mxu0 %v4318_v26 }
  0xa8   : > { %3300 = vmatpush3.bf16.msra.mxu0 %v3635_v18  ;;  %3287 = vmatprep.mubr.bf16.mxu0 %v4326_v17 }
  0xa9   : > { %3301 = vmatprep.subr.bf16.mxu0 %v3636_v57 }
  0xaa   : > { %3160 = vmatmul.mubr.bf16.gmra.mrb[12].mxu1 %v4152_v34  ;;  %v3640_v34 = vld [vmem:[%s4612_s3 + $0x8] sm:$0xff]  }
  0xab   : > { %3325 = vmatprep.subr.bf16.mxu1 %v3640_v34 }
  0xac   : > { %3302 = vmatpush3.bf16.msra.mxu0 %v3636_v57  ;;  %3326 = vmatpush3.bf16.msra.mxu1 %v3640_v34 }
  0xad   : > { %3303 = vmatprep.subr.bf16.mxu0 %v3637_v23 }
  0xaf   : > { %3288 = vmatmul.mubr.bf16.gmra.mrb[12].mxu0 %v4361_v55 }
  0xb0   : > { %3304 = vmatpush3.bf16.msra.mxu0 %v3637_v23  ;;  %3307 = vmatprep.mubr.bf16.mxu0 %v4238_v40  ;;  %v3641_v40 = vld [vmem:[%s4612_s3 + $0x10] sm:$0xff]  }
  0xb1   : > { %3305 = vmatprep.subr.bf16.mxu0 %v3638_v12  ;;  %3327 = vmatprep.subr.bf16.mxu1 %v3641_v40 }
  0xb2   : > { %3328 = vmatpush3.bf16.msra.mxu1 %v3641_v40 }
  0xb4   : > { %3306 = vmatpush3.bf16.msra.mxu0 %v3638_v12 }
  0xb7   : > { %3308 = vmatmul.mubr.bf16.vlgmr.msra.gmra.mrb[0].mxu0 %v4264_v24  ;;  %v3642_v24 = vld [vmem:[%s4612_s3 + $0x18] sm:$0xff]  }
  0xb8   : > { %3311 = vmatprep.mubr.bf16.mxu0 %v4276_v19  ;;  %3329 = vmatprep.subr.bf16.mxu1 %v3642_v24  ;;  %v3643_v19 = vld [vmem:[%s4612_s3 + $0x20] sm:$0xff]  }
  0xb9   : > { %3330 = vmatpush3.bf16.msra.mxu1 %v3642_v24 }
  0xba   : > { %3331 = vmatprep.subr.bf16.mxu1 %v3643_v19 }
  0xbd   : > { %3332 = vmatpush3.bf16.msra.mxu1 %v3643_v19 }
  0xbf   : > { %3312 = vmatmul.mubr.bf16.gmra.mrb[4].mxu0 %v4282_v30  ;;  %v3644_v30 = vld [vmem:[%s4612_s3 + $0x28] sm:$0xff]  }
  0xc0   : > { %3315 = vmatprep.mubr.bf16.mxu0 %v4318_v26  ;;  %3333 = vmatprep.subr.bf16.mxu1 %v3644_v30  ;;  %v3645_v26 = vld [vmem:[%s4612_s3 + $0x30] sm:$0xff]  }
  0xc1   : > { %3334 = vmatpush3.bf16.msra.mxu1 %v3644_v30 }
  0xc2   : > { %3335 = vmatprep.subr.bf16.mxu1 %v3645_v26 }
  0xc5   : > { %3336 = vmatpush3.bf16.msra.mxu1 %v3645_v26 }
  0xc7   : > { %3316 = vmatmul.mubr.bf16.gmra.mrb[8].mxu0 %v4326_v17  ;;  %v3646_v17 = vld [vmem:[%s4612_s3 + $0x38] sm:$0xff]  }
  0xc8   : > { %3319 = vmatprep.mubr.bf16.mxu0 %v4361_v55  ;;  %3337 = vmatprep.subr.bf16.mxu1 %v3646_v17 }
  0xc9   : > { %3338 = vmatpush3.bf16.msra.mxu1 %v3646_v17 }
  0xcf   : > { %3320 = vmatmul.mubr.bf16.gmra.mrb[12].mxu0 %v2849_v46 }
 0x165   : > { %v3149_v11 = vpop.f32.mrb[0].mxu1 }
 0x166   : > { %v1191_v29 = vpop.f32.mrb[1].mxu1 }
 0x167   : > { %v3150_v1 = vpop.f32.mrb[2].mxu1 }
 0x168   : > { %v1194_v59 = vpop.f32.mrb[3].mxu1 }
 0x16d   : > { %v3153_v48 = vpop.f32.mrb[4].mxu1 }
 0x16e   : > { %v1207_v54 = vpop.f32.mrb[5].mxu1 }
 0x16f   : > { %v3154_v20 = vpop.f32.mrb[6].mxu1 }
 0x170   : > { %v1210_v47 = vpop.f32.mrb[7].mxu1 }
 0x175   : > { %v3157_v36 = vpop.f32.mrb[8].mxu1 }
 0x176   : > { %v1223_v21 = vpop.f32.mrb[9].mxu1 }
 0x177   : > { %v3158_v25 = vpop.f32.mrb[10].mxu1 }
 0x178   : > { %v1226_v9 = vpop.f32.mrb[11].mxu1 }
 0x17d   : > { %v3161_v31 = vpop.f32.mrb[12].mxu1 }
 0x17e   : > { %v4494_v32 = vpop.f32.mrb[13].mxu1 }
 0x17f   : > { %v4496_v62 = vpop.f32.mrb[14].mxu1 }
 0x180   : > { %v4498_v50 = vpop.f32.mrb[15].mxu1 }
 0x18a   : > { %v3309_v28 = vpop.f32.mrb[0].mxu0 }
 0x18b   : > { %v3355_v14 = vadd.f32 %v3309_v28, %v3149_v11  ;;  %v2212_v45 = vpop.f32.mrb[1].mxu0 }
 0x18c   : > { %v3356_v33 = vadd.f32 %v2212_v45, %v1191_v29  ;;  %v3310_v4 = vpop.f32.mrb[2].mxu0 }
 0x18d   : > { %v2300_v43 = vadd.f32 %v3355_v14, %v4503_v10  ;;  %v3357_v55 = vadd.f32 %v3310_v4, %v3150_v1  ;;  %v2215_v2 = vpop.f32.mrb[3].mxu0 }
 0x18e   : > { %v2298_v16 = vadd.f32 %v3356_v33, %v4503_v10  ;;  %v3358_v15 = vadd.f32 %v2215_v2, %v1194_v59 }
 0x18f   : > { %v2301_v46 = vadd.f32 %v3357_v55, %v4503_v10  ;;  %v2316_v27 = vmax.f32 %v2300_v43, 0.0 }
 0x190   : > { %v2299_v52 = vadd.f32 %v3358_v15, %v4503_v10  ;;  %v2314_v3 = vmax.f32 %v2298_v16, 0.0 }
 0x191   : > { %v2317_v58 = vmax.f32 %v2301_v46, 0.0 }
 0x192   : > { %v2315_v63 = vmax.f32 %v2299_v52, 0.0  ;;  %v3313_v60 = vpop.f32.mrb[4].mxu0 }
 0x193   : > { %v2331_v41 = vpack.c.bf16 %v2317_v58, %v2316_v27  ;;  %v3359_v49 = vadd.f32 %v3313_v60, %v3153_v48  ;;  %v2228_v42 = vpop.f32.mrb[5].mxu0 }
 0x194   : > { %v3360_v35 = vadd.f32 %v2228_v42, %v1207_v54  ;;  %v3314_v22 = vpop.f32.mrb[6].mxu0  ;;  %v2330_v61 = vpack.c.bf16 %v2315_v63, %v2314_v3 }
 0x195   : > { %v2304_v6 = vadd.f32 %v3359_v49, %v4503_v10  ;;  %v3361_v13 = vadd.f32 %v3314_v22, %v3154_v20  ;;  %v2231_v7 = vpop.f32.mrb[7].mxu0 }
 0x196   : > { %v2302_v8 = vadd.f32 %v3360_v35, %v4503_v10  ;;  %v3362_v5 = vadd.f32 %v2231_v7, %v1210_v47  ;;  %3339 = vmatprep.mubr.bf16.mxu1 %v2330_v61 }
 0x197   : > { %v2305_v38 = vadd.f32 %v3361_v13, %v4503_v10  ;;  %3340 = vmatmul.mubr.bf16.vlgmr.msra.gmra.mrb[16].mxu1 %v2331_v41  ;;  %v2320_v53 = vmax.f32 %v2304_v6, 0.0 }
 0x198   : > { %v2303_v37 = vadd.f32 %v3362_v5, %v4503_v10  ;;  %v2318_v51 = vmax.f32 %v2302_v8, 0.0 }
 0x199   : > { %v2321_v44 = vmax.f32 %v2305_v38, 0.0 }
 0x19a   : > { %v2319_v56 = vmax.f32 %v2303_v37, 0.0  ;;  %v3317_v0 = vpop.f32.mrb[8].mxu0 }
 0x19b   : > { %v3363_v18 = vadd.f32 %v3317_v0, %v3157_v36  ;;  %v2244_v57 = vpop.f32.mrb[9].mxu0  ;;  %v2333_v23 = vpack.c.bf16 %v2321_v44, %v2320_v53 }
 0x19c   : > { %v3364_v12 = vadd.f32 %v2244_v57, %v1223_v21  ;;  %v3318_v39 = vpop.f32.mrb[10].mxu0  ;;  %v2332_v34 = vpack.c.bf16 %v2319_v56, %v2318_v51 }
 0x19d   : > { %v2308_v40 = vadd.f32 %v3363_v18, %v4503_v10  ;;  %v3365_v24 = vadd.f32 %v3318_v39, %v3158_v25  ;;  %v2247_v19 = vpop.f32.mrb[11].mxu0 }
 0x19e   : > { %v2306_v30 = vadd.f32 %v3364_v12, %v4503_v10  ;;  %v3366_v26 = vadd.f32 %v2247_v19, %v1226_v9  ;;  %3343 = vmatprep.mubr.bf16.mxu1 %v2332_v34 }
 0x19f   : > { %v2309_v17 = vadd.f32 %v3365_v24, %v4503_v10  ;;  %3344 = vmatmul.mubr.bf16.gmra.mrb[20].mxu1 %v2333_v23  ;;  %v2324_v29 = vmax.f32 %v2308_v40, 0.0 }
 0x1a0   : > { %v2307_v11 = vadd.f32 %v3366_v26, %v4503_v10  ;;  %v2322_v59 = vmax.f32 %v2306_v30, 0.0 }
 0x1a1   : > { %v2325_v1 = vmax.f32 %v2309_v17, 0.0 }
 0x1a2   : > { %v2323_v48 = vmax.f32 %v2307_v11, 0.0  ;;  %v3321_v54 = vpop.f32.mrb[12].mxu0 }
 0x1a3   : > { %v3367_v20 = vadd.f32 %v3321_v54, %v3161_v31  ;;  %v2260_v47 = vpop.f32.mrb[13].mxu0  ;;  %v2335_v36 = vpack.c.bf16 %v2325_v1, %v2324_v29 }
 0x1a4   : > { %v3368_v21 = vadd.f32 %v2260_v47, %v4494_v32  ;;  %v3322_v25 = vpop.f32.mrb[14].mxu0  ;;  %v2334_v28 = vpack.c.bf16 %v2323_v48, %v2322_v59 }
 0x1a5   : > { %v2312_v9 = vadd.f32 %v3367_v20, %v4503_v10  ;;  %v3369_v14 = vadd.f32 %v3322_v25, %v4496_v62  ;;  %v2263_v45 = vpop.f32.mrb[15].mxu0 }
 0x1a6   : > { %v2310_v33 = vadd.f32 %v3368_v21, %v4503_v10  ;;  %v3370_v4 = vadd.f32 %v2263_v45, %v4498_v50  ;;  %3347 = vmatprep.mubr.bf16.mxu1 %v2334_v28 }
 0x1a7   : > { %v2313_v31 = vadd.f32 %v3369_v14, %v4503_v10  ;;  %3348 = vmatmul.mubr.bf16.gmra.mrb[24].mxu1 %v2335_v36  ;;  %v2328_v32 = vmax.f32 %v2312_v9, 0.0 }
 0x1a8   : > { %v2311_v43 = vadd.f32 %v3370_v4, %v4503_v10  ;;  %v2326_v2 = vmax.f32 %v2310_v33, 0.0 }
 0x1a9   : > { %v2329_v55 = vmax.f32 %v2313_v31, 0.0 }
 0x1aa   : > { %v2327_v16 = vmax.f32 %v2311_v43, 0.0 }
 0x1ab   : > { %v2337_v15 = vpack.c.bf16 %v2329_v55, %v2328_v32 }
 0x1ac   : > { %v2336_v46 = vpack.c.bf16 %v2327_v16, %v2326_v2 }
 0x1ae   : > { %3351 = vmatprep.mubr.bf16.mxu1 %v2336_v46 }
 0x1af   : > { %3352 = vmatmul.mubr.bf16.gmra.mrb[28].mxu1 %v2337_v15 }
 0x26a   : > { %v3341_v62 = vpop.f32.mrb[16].mxu1 }
 0x26b   : > { %2501 = vst [vmem:[%s4527_s14 + $0x10] sm:$0xff] %v3341_v62  ;;  %v2436_v50 = vpop.f32.mrb[17].mxu1 }
 0x26c   : > { %2499 = vst [vmem:[%s4527_s14] sm:$0xff] %v2436_v50  ;;  %v3342_v10 = vpop.f32.mrb[18].mxu1 }
 0x26d   : > { %2502 = vst [vmem:[%s4527_s14 + $0x18] sm:$0xff] %v3342_v10  ;;  %v2439_v52 = vpop.f32.mrb[19].mxu1 }
 0x26e   : > { %2500 = vst [vmem:[%s4527_s14 + $0x8] sm:$0xff] %v2439_v52 }
 0x272   : > { %v3345_v27 = vpop.f32.mrb[20].mxu1 }
 0x273   : > { %2505 = vst [vmem:[%s4527_s14 + $0x30] sm:$0xff] %v3345_v27  ;;  %v2452_v58 = vpop.f32.mrb[21].mxu1 }
 0x274   : > { %2503 = vst [vmem:[%s4527_s14 + $0x20] sm:$0xff] %v2452_v58  ;;  %v3346_v3 = vpop.f32.mrb[22].mxu1 }
 0x275   : > { %2506 = vst [vmem:[%s4527_s14 + $0x38] sm:$0xff] %v3346_v3  ;;  %v2455_v63 = vpop.f32.mrb[23].mxu1 }
 0x276   : > { %2504 = vst [vmem:[%s4527_s14 + $0x28] sm:$0xff] %v2455_v63 }
 0x27a   : > { %v3349_v60 = vpop.f32.mrb[24].mxu1 }
 0x27b   : > { %2509 = vst [vmem:[%s4527_s14 + $0x50] sm:$0xff] %v3349_v60  ;;  %v2468_v41 = vpop.f32.mrb[25].mxu1 }
 0x27c   : > { %2507 = vst [vmem:[%s4527_s14 + $0x40] sm:$0xff] %v2468_v41  ;;  %v3350_v49 = vpop.f32.mrb[26].mxu1 }
 0x27d   : > { %2510 = vst [vmem:[%s4527_s14 + $0x58] sm:$0xff] %v3350_v49  ;;  %v2471_v42 = vpop.f32.mrb[27].mxu1 }
 0x27e   : > { %2508 = vst [vmem:[%s4527_s14 + $0x48] sm:$0xff] %v2471_v42 }
 0x282   : > { %v3353_v35 = vpop.f32.mrb[28].mxu1 }
 0x283   : > { %2513 = vst [vmem:[%s4527_s14 + $0x70] sm:$0xff] %v3353_v35  ;;  %v2484_v22 = vpop.f32.mrb[29].mxu1 }
 0x284   : > { %2511 = vst [vmem:[%s4527_s14 + $0x60] sm:$0xff] %v2484_v22  ;;  %v3354_v61 = vpop.f32.mrb[30].mxu1 }
 0x285   : > { %2514 = vst [vmem:[%s4527_s14 + $0x78] sm:$0xff] %v3354_v61  ;;  %v2487_v6 = vpop.f32.mrb[31].mxu1 }
 0x286   : > { %2512 = vst [vmem:[%s4527_s14 + $0x68] sm:$0xff] %v2487_v6 }
 0x287   : > { %3660 = shalt.err (!%p3657_p6)
}
 0x288   : > { %s3661_s8 = scalar_lea.hbm %s4548_s6, 2048  ;;  %s3665_s24 = scalar_lea.hbm %s4613_s4, 8192 }
 0x289   : > { %p3662_p7 = scmp.ne.s32.totalorder %s4548_s6, %s3661_s8  ;;  %p3666_p11 = scmp.lt.u32.totalorder %s4548_s6, %s4613_s4 }
 0x28a   : > { %p3667_p12 = scmp.lt.u32.totalorder %s3665_s24, %s3661_s8  ;;  %p3669_p0 = scmp.lt.u32.totalorder %s3661_s8, %s4548_s6 }
 0x28b   : > { %p3663_p9 = pnand %p3662_p7, %p3822_p3 }
 0x28c   : > { %p3668_p13 = por %p3667_p12, %p3666_p11 }
 0x28d   : > { %p3664_p10 = pneg %p3663_p9 }
 0x28e   : > { %p3670_p1 = por %p3669_p0, %p3668_p13 }
 0x290   : > { %p3671_p2 = pnand %p3670_p1, %p3664_p10 }
 0x292   : > { %3674 = shalt.err (!%p3671_p2)
}
 0x293   : > { %s3744_s18 = smov 128   ;;  %s3745_s19 = smov 8  }
 0x294   : > { %3484 = dma.vmem_to_hbm [thread:$0]  (%p3822_p3), %s4550_s5, 2048, %s4548_s6, %s4557_s13, %s3744_s18, %s3744_s18, %s3745_s19  }
 0x295 PF: > { %p3490_p4 = scmp.ge.s32.totalorder %s3741_s22, 2  ;;  %s2547_s9 = sand.u32 1, %s3713_s15  }
 0x296   : > { %s2548_s10 = scalar_lea.sflag [#allocation3], %s2547_s9 }
 0x297   : > { %p3487_p5 = pnand %p3490_p4, %p3831_p8 }
 0x299   : > { %3708 = dma.done.wait (!%p3487_p5), %s2548_s10, 2048  }
 0x29a   : > { %3710 = vsyncadd (!%p3487_p5), %s2548_s10, 4294965248  ;;  %s17_s22 = sadd.s32 1, %s3741_s22   ;;  %s4623_s15 = smov %s3717_s16 }
 0x29b   : > { %p14_p6 = scmp.ge.s32.totalorder %s17_s22, 6   ;;  %s4624_s16 = smov %s3721_s17 }
 0x29c   : > { %s4625_s17 = smov %s3840_s7  ;;  %s4626_s18 = smov %s3733_s20 }
 0x29d   : > { %s4627_s19 = smov %s3737_s21  ;;  %s4628_s20 = smov %s4631_s25 }
 0x29e   : > { %s4629_s21 = smov %s4635_s26  ;;  %16 = sbr.rel (!%p14_p6) target bundleno = 5 (0x5), region = 79 }
 0x2a5   :  { %2553 = vsyncpa [#allocation3], 1 }
 0x2a6   :  { %2555 = vsyncpa [#allocation3 + $0x1], 1 }

// kernel: tpu_custom_call.1
= control target key start
LH: loop header
LB: loop body
LE: loop exit
PB: predicated region body
PF: predicated region fallthrough
CT: control target
= control target key end

     0   :  { %9 = vsyncpa [#allocation3], 0  ;;  %s4609_s0 = inlined_call_operand.vmem [shape: bf16[4,10,18,128], index: 0, kind: input, shape index: {}]   ;;  %s4610_s1 = inlined_call_operand.vmem [shape: bf16[9,128,128], index: 1, kind: input, shape index: {}]   ;;  %s4611_s2 = inlined_call_operand.vmem [shape: f32[1,128], index: 2, kind: input, shape index: {}]   ;;  %s4612_s3 = inlined_call_operand.vmem [shape: bf16[128,128], index: 3, kind: input, shape index: {}]   ;;  %s4613_s4 = inlined_call_operand.hbm [shape: f32[2,16,16,128], index: 4, kind: output, shape index: {}]  }
   0x1   :  { %11 = vsyncpa [#allocation3 + $0x1], 0  ;;  %s3771_s15 = smov 0   ;;  %s3773_s16 = smov 0  }
   0x2   :  { %s3775_s17 = smov 0   ;;  %s3777_s18 = smov 0  }
   0x3   :  { %s3779_s19 = smov 0   ;;  %s3781_s20 = smov 0  }
   0x4   :  { %s3783_s21 = smov 0   ;;  %s3785_s22 = smov 0  }
   0x5 LB: > { %s2608_s23 = sadd.s32 4294967295, %s3741_s22   ;;  %s2609_s24 = sadd.s32 4294967294, %s3741_s22   ;;  %s3741_s22 = sphi %s3785_s22, %s17_s22   ;;  %s3737_s21 = sphi %s3783_s21, %s4629_s21   ;;  %s3733_s20 = sphi %s3781_s20, %s4628_s20   ;;  %s3729_s19 = sphi %s3779_s19, %s4627_s19   ;;  %s3725_s18 = sphi %s3777_s18, %s4626_s18   ;;  %s3721_s17 = sphi %s3775_s17, %s4625_s17   ;;  %s3717_s16 = sphi %s3773_s16, %s4624_s16   ;;  %s3713_s15 = sphi %s3771_s15, %s4623_s15  }
   0x6   : > { %s26_s25 = sadd.s32 1, %s3733_s20  ;;  %s29_s26 = sadd.s32 1, %s3737_s21 }
   0x7   : > { %p27_p0 = scmp.ge.s32.totalorder %s26_s25, 2  ;;  %p141_p1 = scmp.ne.s32.totalorder %s3721_s17, %s3717_s16 }
   0x8   : > { %p142_p2 = scmp.eq.s32.totalorder %s2608_s23, 3  ;;  %p147_p5 = scmp.ne.s32.totalorder %s3717_s16, %s3713_s15 }
   0x9   : > { %s4631_s25 = smov (%p27_p0, %s26_s25), 0  ;;  %s4633_s26 = smov (!%p27_p0, %s29_s26), %s3737_s21 }
   0xa   : > { %s127_s27 = ssub.s32 %s3733_s20, %s4631_s25  ;;  %p3822_p3 = por %p142_p2, %p141_p1 }
   0xb   : > { %p31_p4 = scmp.ge.s32.totalorder %s4633_s26, 2  ;;  %p148_p6 = scmp.eq.s32.totalorder %s2609_s24, 3 }
   0xc   : > { %p2614_p7 = scmp.ge.s32.totalorder %s3741_s22, 1  ;;  %p187_p9 = scmp.lt.s32.totalorder %s3741_s22, 5 }
   0xd   : > { %s4635_s26 = smov (%p31_p4, %s4633_s26), 0  ;;  %p3831_p8 = por %p148_p6, %p147_p5 }
   0xe   : > { %s126_s30 = ssub.s32 %s3737_s21, %s4635_s26  ;;  %s131_s5 = sadd.s32 1, %s3721_s17 }
   0xf   : > { %s128_s6 = sor.u32 %s127_s27, %s126_s30  ;;  %p188_p10 = pnand %p2614_p7, %p187_p9 }
  0x10   : > { %p129_p11 = scmp.eq.s32.totalorder %s128_s6, 0  ;;  %v3557_v0 = vld [vmem:[%s4610_s1 + $0xc0] sm:$0xff] (!%p188_p10)   ;;  %s2616_s10 = sshll.u32 (!%p188_p10), %s3729_s19, 1  ;;  %v3559_v2 = vld [vmem:[%s4610_s1 + $0xc8] sm:$0xff] (!%p188_p10)   ;;  %v3561_v4 = vld [vmem:[%s4610_s1 + $0xd0] sm:$0xff] (!%p188_p10)   ;;  %vm1644_vm0 = vcmask (!%p188_p10), 1042432  }
  0x11   : > { %191 = sbr.rel (%p188_p10) target bundleno = 661 (0x295), region = 36  ;;  %v3558_v1 = vld [vmem:[%s4610_s1 + $0x100] sm:$0xff] (!%p188_p10)   ;;  %s216_s13 = sadd.s32 (!%p188_p10), %s3725_s18, %s2616_s10  ;;  %3035 = vmatprep.subr.bf16.mxu1 (!%p188_p10), %v3557_v0  ;;  %v3560_v3 = vld [vmem:[%s4610_s1 + $0x108] sm:$0xff] (!%p188_p10)   ;;  %v3562_v5 = vld [vmem:[%s4610_s1 + $0x110] sm:$0xff] (!%p188_p10)   ;;  %vm1645_vm1 = vcmask (!%p188_p10), 1046532  }
  0x12   : > { %s3840_s7 = scalar_select %p129_p11, %s3721_s17, %s131_s5  }
  0x13   : > { %p217_p12 = scmp.lt.s32.totalorder (!%p188_p10), %s216_s13, 3  ;;  %3163 = vmatprep.subr.bf16.mxu0 (!%p188_p10), %v3558_v1  ;;  %3036 = vmatpush3.bf16.msra.mxu1 (!%p188_p10), %v3557_v0  ;;  %v3563_v6 = vld [vmem:[%s4610_s1 + $0xd8] sm:$0xff] (!%p188_p10)   ;;  %v3565_v8 = vld [vmem:[%s4610_s1 + $0xe0] sm:$0xff] (!%p188_p10)   ;;  %v3567_v10 = vld [vmem:[%s4610_s1 + $0xe8] sm:$0xff] (!%p188_p10)   ;;  %vm817_vm2 = vsmask.f32 (!%p188_p10), 3328 }
  0x14   : > { %3164 = vmatpush3.bf16.msra.mxu0 (!%p188_p10), %v3558_v1  ;;  %3037 = vmatprep.subr.bf16.mxu1 (!%p188_p10), %v3559_v2  ;;  %v3564_v7 = vld [vmem:[%s4610_s1 + $0x118] sm:$0xff] (!%p188_p10)   ;;  %v3566_v9 = vld [vmem:[%s4610_s1 + $0x120] sm:$0xff] (!%p188_p10)   ;;  %v3568_v14 = vld [vmem:[%s4610_s1 + $0x128] sm:$0xff] (!%p188_p10)   ;;  %vm818_vm3 = vsmask.f32 (!%p188_p10), 7440  ;;  %s2874_s23 = sshll.u32 (!%p188_p10), %s3725_s18, 4 }
  0x15   : > { %3165 = vmatprep.subr.bf16.mxu0 (!%p188_p10), %v3560_v3  ;;  %vm3899_vm4 = vmor (!%p188_p10), %vm1644_vm0, %vm1645_vm1  ;;  %v3569_v28 = vld [vmem:[%s4610_s1 + $0xf0] sm:$0xff] (!%p188_p10)   ;;  %v3571_v47 = vld [vmem:[%s4610_s1 + $0xf8] sm:$0xff] (!%p188_p10)   ;;  %s2870_s24 = sshll.u32 (!%p188_p10), %s3729_s19, 5  ;;  %s3743_s10 = smov (!%p188_p10), [#allocation2]  }
  0x16   : > { %v3570_v32 = vld [vmem:[%s4610_s1 + $0x130] sm:$0xff] (!%p188_p10)   ;;  %vm3913_vm5 = vmor (!%p188_p10), %vm817_vm2, %vm818_vm3  ;;  %v3572_v52 = vld [vmem:[%s4610_s1 + $0x138] sm:$0xff] (!%p188_p10)   ;;  %s2529_s27 = sadd.s32 (!%p188_p10), %s2874_s23, %s2870_s24  ;;  %s3651_s11 = sshll.u32 (!%p188_p10), %s3743_s10, 4  ;;  %s3652_s11 = int_to_ptr.vmem [resolvable:$false] %s3651_s11 }
  0x17   : > { %3038 = vmatpush3.bf16.msra.mxu1 (!%p188_p10), %v3559_v2  ;;  %v3575_v60 = vld [vmem:[%s4610_s1] sm:$0xff] (!%p188_p10)   ;;  %v3628_v37 = vld [vmem:[%s4610_s1 + $0x170] sm:$0xff] (!%p188_p10)   ;;  %s2871_s30 = sshll.u32 (!%p188_p10), %s2529_s27, 7 }
  0x18   : > { %s4637_s13 = smov (!%p217_p12, %s216_s13), 3  ;;  %3166 = vmatpush3.bf16.msra.mxu0 %v3560_v3  ;;  %3039 = vmatprep.subr.bf16.mxu1 %v3561_v4  ;;  %v3622_v27 = vld [vmem:[%s4610_s1 + $0x60] sm:$0xff]   ;;  %s4548_s6 = scalar_lea.hbm %s4613_s4, %s2871_s30 }
  0x19   : > { %3167 = vmatprep.subr.bf16.mxu0 %v3562_v5  ;;  %s3483_s14 = smul.u32 120, %s4637_s13 }
  0x1b   : > { %3040 = vmatpush3.bf16.msra.mxu1 %v3561_v4  ;;  %s3877_s8 = scalar_lea.vmem %s4609_s0, %s3483_s14 }
  0x1c   : > { %3168 = vmatpush3.bf16.msra.mxu0 %v3562_v5  ;;  %3041 = vmatprep.subr.bf16.mxu1 %v3563_v6  ;;  %v229_v11 = vld [vmem:[%s3877_s8 + $0xc] sm:$0xf]  ;;  %v230_v12 = vld [vmem:[%s3877_s8 + $0x10] sm:$0xf]  ;;  %v231_v13 = vld [vmem:[%s3877_s8 + $0x14] sm:$0x1] }
  0x1d   : > { %3169 = vmatprep.subr.bf16.mxu0 %v3564_v7  ;;  %v3888_v15 = vcombine.low %v229_v11, %v230_v12  ;;  %v845_v16 = vshrl.u32 %v229_v11, 16  ;;  %v848_v17 = vshll.u32 %v229_v11, 16  ;;  %v858_v18 = vshrl.u32 %v230_v12, 16  ;;  %v3891_v19 = vld [vmem:[%s3877_s8 + $0x18] sm:$0xf] }
  0x1e   : > { %v2767_v20 = vrot.slane %v229_v11, 9  ;;  %v1656_v21 = vrot.slane %v230_v12, 5  ;;  %v854_v24 = vshll.u32 %v230_v12, 16  ;;  %v3895_v26 = vld [vmem:[%s3877_s8 + $0x1c] sm:$0xf]  ;;  %v864_v30 = vshll.u32 %v231_v13, 16 }
  0x1f   : > { %3042 = vmatpush3.bf16.msra.mxu1 %v3563_v6  ;;  %3051 = vmatprep.mubr.bf16.mxu1 %v3888_v15  ;;  %v847_v22 = vrot.slane %v845_v16, 4  ;;  %v850_v23 = vrot.slane %v848_v17, 5  ;;  %v860_v25 = vrot.slane %v858_v18, 4  ;;  %v1659_v31 = vrot.slane %v231_v13, 5  ;;  %v3919_v40 = vld [vmem:[%s3877_s8 + $0x20] sm:$0x1] }
  0x20   : > { %3170 = vmatpush3.bf16.msra.mxu0 %v3564_v7  ;;  %3043 = vmatprep.subr.bf16.mxu1 %v3565_v8  ;;  %v1658_v29 = vrot.slane %v1656_v21, 4  ;;  %v856_v34 = vrot.slane %v854_v24, 5  ;;  %v869_v35 = vshrl.u32 %v3891_v19, 16  ;;  %v872_v36 = vshll.u32 %v3891_v19, 16  ;;  %v3943_v62 = vld [vmem:[%s3877_s8 + $0x24] sm:$0xf] }
  0x21   : > { %3171 = vmatprep.subr.bf16.mxu0 %v3566_v9  ;;  %v851_v33 = vor.u32 %v850_v23, %v847_v22  ;;  %v866_v38 = vrot.slane %v864_v30, 5  ;;  %v882_v39 = vshrl.u32 %v3895_v26, 16  ;;  %v878_v41 = vshll.u32 %v3895_v26, 16  ;;  %v3946_v63 = vld [vmem:[%s3877_s8 + $0x28] sm:$0xf]  ;;  %v3576_v7 = vld [vmem:[%s4610_s1 + $0x1c0] sm:$0xff]  }
  0x22   : > { %v1657_v42 = vsel %vm3899_vm4, %v2767_v20, %v1656_v21  ;;  %v861_v44 = vor.u32 %v860_v25, %v856_v34  ;;  %v871_v45 = vrot.slane %v869_v35, 4  ;;  %v874_v46 = vrot.slane %v872_v36, 5  ;;  %v3956_v4 = vld [vmem:[%s3877_s8 + $0x2c] sm:$0x1]  ;;  %v3959_v5 = vld [vmem:[%s3877_s8 + $0x30] sm:$0xf] }
  0x23   : > { %3044 = vmatpush3.bf16.msra.mxu1 %v3565_v8  ;;  %v852_v43 = vrot.slane %v851_v33, 4  ;;  %v880_v48 = vrot.slane %v878_v41, 5  ;;  %v884_v49 = vrot.slane %v882_v39, 4  ;;  %v888_v50 = vshll.u32 %v3919_v40, 16  ;;  %v3970_v11 = vld [vmem:[%s3877_s8 + $0x34] sm:$0xf] }
  0x24   : > { %3172 = vmatpush3.bf16.msra.mxu0 %v3566_v9  ;;  %3045 = vmatprep.subr.bf16.mxu1 %v3567_v10  ;;  %v1660_v51 = vsel %vm3899_vm4, %v1658_v29, %v1659_v31  ;;  %v862_v54 = vrot.slane %v861_v44, 4  ;;  %v875_v55 = vor.u32 %v874_v46, %v871_v45  ;;  %v3952_v1 = vcombine.low %v3891_v19, %v3895_v26  ;;  %v3577_v13 = vld [vmem:[%s4610_s1 + $0x8] sm:$0xff]   ;;  %v3989_v24 = vld [vmem:[%s3877_s8 + $0x38] sm:$0x1] }
  0x25   : > { %3173 = vmatprep.subr.bf16.mxu0 %v3568_v14  ;;  %v857_v53 = vsel %vm3913_vm5, %v852_v43, %v856_v34  ;;  %v3935_v56 = vcombine.low %v1657_v42, %v1660_v51  ;;  %v885_v57 = vor.u32 %v884_v49, %v880_v48  ;;  %v890_v58 = vrot.slane %v888_v50, 5  ;;  %v3578_v20 = vld [vmem:[%s4610_s1 + $0x1c8] sm:$0xff]   ;;  %v3581_v42 = vld [vmem:[%s4610_s1 + $0x10] sm:$0xff]  }
  0x26   : > { %v867_v59 = vsel %vm3913_vm5, %v862_v54, %v866_v38  ;;  %v876_v61 = vrot.slane %v875_v55, 4  ;;  %v893_v3 = vshrl.u32 %v3943_v62, 16  ;;  %v896_v8 = vshll.u32 %v3943_v62, 16  ;;  %v4021_v54 = vld [vmem:[%s3877_s8 + $0x44] sm:$0x1] }
  0x27   : > { %3046 = vmatpush3.bf16.msra.mxu1 %v3567_v10  ;;  %v3948_v0 = vcombine.low %v857_v53, %v867_v59  ;;  %v886_v2 = vrot.slane %v885_v57, 4  ;;  %v906_v9 = vshrl.u32 %v3946_v63, 16  ;;  %v902_v10 = vshll.u32 %v3946_v63, 16  ;;  %v4024_v55 = vld [vmem:[%s3877_s8 + $0x48] sm:$0xf]  ;;  %v3583_v59 = vld [vmem:[%s4610_s1 + $0x18] sm:$0xff]  }
  0x28   : > { %3174 = vmatpush3.bf16.msra.mxu0 %v3568_v14  ;;  %3047 = vmatprep.subr.bf16.mxu1 %v3569_v28  ;;  %v881_v6 = vsel %vm3913_vm5, %v876_v61, %v880_v48  ;;  %v3980_v14 = vcombine.low %v3943_v62, %v3946_v63  ;;  %v895_v16 = vrot.slane %v893_v3, 4  ;;  %v912_v17 = vshll.u32 %v3956_v4, 16  ;;  %v4009_v48 = vld [vmem:[%s3877_s8 + $0x40] sm:$0xf] }
  0x29   : > { %3175 = vmatprep.subr.bf16.mxu0 %v3570_v32  ;;  %3179 = vmatprep.mubr.bf16.mxu0 %v3948_v0  ;;  %v891_v12 = vsel %vm3913_vm5, %v886_v2, %v890_v58  ;;  %v898_v21 = vrot.slane %v896_v8, 5  ;;  %v904_v22 = vrot.slane %v902_v10, 5  ;;  %v908_v23 = vrot.slane %v906_v9, 4  ;;  %v4037_v2 = vld [vmem:[%s3877_s8 + $0x4c] sm:$0xf] }
  0x2a   : > { %v3983_v18 = vcombine.low %v881_v6, %v891_v12  ;;  %v914_v25 = vrot.slane %v912_v17, 5  ;;  %v920_v29 = vshll.u32 %v3959_v5, 16  ;;  %v930_v30 = vshrl.u32 %v3970_v11, 16  ;;  %v3584_v17 = vld [vmem:[%s4610_s1 + $0x1d8] sm:$0xff]  }
  0x2b   : > { %3048 = vmatpush3.bf16.msra.mxu1 %v3569_v28  ;;  %v917_v28 = vshrl.u32 %v3959_v5, 16  ;;  %v899_v31 = vor.u32 %v898_v21, %v895_v16  ;;  %v926_v33 = vshll.u32 %v3970_v11, 16  ;;  %v936_v34 = vshll.u32 %v3989_v24, 16  ;;  %v4046_v16 = vld [vmem:[%s3877_s8 + $0x50] sm:$0x1] }
  0x2c   : > { %3176 = vmatpush3.bf16.msra.mxu0 %v3570_v32  ;;  %3049 = vmatprep.subr.bf16.mxu1 %v3571_v47  ;;  %v909_v32 = vor.u32 %v908_v23, %v904_v22  ;;  %v922_v36 = vrot.slane %v920_v29, 5  ;;  %v932_v38 = vrot.slane %v930_v30, 4  ;;  %v4003_v45 = vcombine.low %v3959_v5, %v3970_v11 }
  0x2d   : > { %3177 = vmatprep.subr.bf16.mxu0 %v3572_v52  ;;  %v919_v35 = vrot.slane %v917_v28, 4  ;;  %v900_v39 = vrot.slane %v899_v31, 4  ;;  %v928_v43 = vrot.slane %v926_v33, 5  ;;  %v938_v44 = vrot.slane %v936_v34, 5 }
  0x2e   : > { %v910_v41 = vrot.slane %v909_v32, 4  ;;  %v954_v6 = vshrl.u32 %v4009_v48, 16  ;;  %v950_v8 = vshll.u32 %v4009_v48, 16  ;;  %v960_v12 = vshll.u32 %v4021_v54, 16 }
  0x2f   : > { %3050 = vmatpush3.bf16.msra.mxu1 %v3571_v47  ;;  %v923_v46 = vor.u32 %v922_v36, %v919_v35  ;;  %v4006_v47 = vld [vmem:[%s3877_s8 + $0x3c] sm:$0xf]  ;;  %v905_v49 = vsel %vm3913_vm5, %v900_v39, %v904_v22  ;;  %v933_v51 = vor.u32 %v932_v38, %v928_v43  ;;  %v965_v22 = vshrl.u32 %v4024_v55, 16  ;;  %v3587_v35 = vld [vmem:[%s4610_s1 + $0x20] sm:$0xff]  }
  0x30   : > { %3178 = vmatpush3.bf16.msra.mxu0 %v3572_v52  ;;  %3067 = vmatprep.subr.bf16.mxu1 %v3575_v60  ;;  %v915_v50 = vsel %vm3913_vm5, %v910_v41, %v914_v25  ;;  %v3582_v52 = vld [vmem:[%s4610_s1 + $0x1d0] sm:$0xff]   ;;  %v941_v53 = vshrl.u32 %v4006_v47, 16  ;;  %v944_v61 = vshll.u32 %v4006_v47, 16  ;;  %v956_v21 = vrot.slane %v954_v6, 4  ;;  %v3589_v6 = vld [vmem:[%s4610_s1 + $0x28] sm:$0xff]  }
  0x31   : > { %3195 = vmatprep.subr.bf16.mxu0 %v3576_v7  ;;  %v4026_v57 = vcombine.low %v905_v49, %v915_v50  ;;  %v924_v58 = vrot.slane %v923_v46, 4  ;;  %v934_v3 = vrot.slane %v933_v51, 4  ;;  %v962_v28 = vrot.slane %v960_v12, 5  ;;  %v4074_v46 = vld [vmem:[%s3877_s8 + $0x54] sm:$0xf] }
  0x32   : > { %3052 = vmatmul.mubr.bf16.vlgmr.msra.gmra.mrb[0].mxu1 %v3952_v1  ;;  %v946_v10 = vrot.slane %v944_v61, 5  ;;  %v968_v29 = vshll.u32 %v4024_v55, 16  ;;  %v978_v31 = vshrl.u32 %v4037_v2, 16  ;;  %v967_v32 = vrot.slane %v965_v22, 4 }
  0x33   : > { %3180 = vmatmul.mubr.bf16.vlgmr.msra.gmra.mrb[0].mxu0 %v3983_v18  ;;  %3068 = vmatpush3.bf16.msra.mxu1 %v3575_v60  ;;  %v4033_v60 = vcombine.low %v4006_v47, %v4009_v48  ;;  %v929_v9 = vsel %vm3913_vm5, %v924_v58, %v928_v43  ;;  %v974_v33 = vshll.u32 %v4037_v2, 16  ;;  %v984_v38 = vshll.u32 %v4046_v16, 16  ;;  %v4083_v58 = vld [vmem:[%s3877_s8 + $0x5c] sm:$0x1] }
  0x34   : > { %3196 = vmatpush3.bf16.msra.mxu0 %v3576_v7  ;;  %3069 = vmatprep.subr.bf16.mxu1 %v3577_v13  ;;  %v943_v7 = vrot.slane %v941_v53, 4  ;;  %v970_v36 = vrot.slane %v968_v29, 5  ;;  %v4068_v41 = vcombine.low %v4024_v55, %v4037_v2  ;;  %v980_v43 = vrot.slane %v978_v31, 4 }
  0x35   : > { %3197 = vmatprep.subr.bf16.mxu0 %v3578_v20  ;;  %3055 = vmatprep.mubr.bf16.mxu1 %v3980_v14  ;;  %v986_v51 = vrot.slane %v984_v38, 5  ;;  %v989_v53 = vshrl.u32 %v4074_v46, 16  ;;  %v1008_v29 = vshll.u32 %v4083_v58, 16 }
  0x36   : > { %3183 = vmatprep.mubr.bf16.mxu0 %v4026_v57  ;;  %v947_v25 = vor.u32 %v946_v10, %v943_v7  ;;  %v971_v50 = vor.u32 %v970_v36, %v967_v32  ;;  %v4099_v10 = vld [vmem:[%s3877_s8 + $0x64] sm:$0xf] }
  0x37   : > { %3070 = vmatpush3.bf16.msra.mxu1 %v3577_v13  ;;  %v939_v13 = vsel %vm3913_vm5, %v934_v3, %v938_v44  ;;  %v3588_v44 = vld [vmem:[%s4610_s1 + $0x1e0] sm:$0xff]   ;;  %v1010_v38 = vrot.slane %v1008_v29, 5 }
  0x38   : > { %3198 = vmatpush3.bf16.msra.mxu0 %v3578_v20  ;;  %3071 = vmatprep.subr.bf16.mxu1 %v3581_v42  ;;  %v952_v20 = vrot.slane %v950_v8, 5  ;;  %v4055_v23 = vcombine.low %v929_v9, %v939_v13  ;;  %v948_v34 = vrot.slane %v947_v25, 4  ;;  %v992_v8 = vshll.u32 %v4074_v46, 16  ;;  %v4096_v9 = vld [vmem:[%s3877_s8 + $0x60] sm:$0xf]  ;;  %v3590_v13 = vld [vmem:[%s4610_s1 + $0x1e8] sm:$0xff]  }
  0x39   : > { %3199 = vmatprep.subr.bf16.mxu0 %v3582_v52  ;;  %v1013_v32 = vshrl.u32 %v4096_v9, 16 }
  0x3a   : > { %3056 = vmatmul.mubr.bf16.gmra.mrb[4].mxu1 %v4003_v45  ;;  %v957_v30 = vor.u32 %v956_v21, %v952_v20  ;;  %v953_v49 = vsel %vm3913_vm5, %v948_v34, %v952_v20  ;;  %v991_v21 = vrot.slane %v989_v53, 4  ;;  %v994_v25 = vrot.slane %v992_v8, 5 }
  0x3b   : > { %3072 = vmatpush3.bf16.msra.mxu1 %v3581_v42  ;;  %3059 = vmatprep.mubr.bf16.mxu1 %v4033_v60  ;;  %v976_v42 = vrot.slane %v974_v33, 5  ;;  %v4115_v33 = vld [vmem:[%s3877_s8 + $0x68] sm:$0x1]  ;;  %v1022_v53 = vshll.u32 %v4099_v10, 16  ;;  %v4135_v8 = vcombine.low %v4096_v9, %v4099_v10 }
  0x3c   : > { %3184 = vmatmul.mubr.bf16.gmra.mrb[4].mxu0 %v4055_v23  ;;  %3073 = vmatprep.subr.bf16.mxu1 %v3583_v59  ;;  %v958_v39 = vrot.slane %v957_v30, 4  ;;  %v995_v34 = vor.u32 %v994_v25, %v991_v21 }
  0x3d   : > { %3200 = vmatpush3.bf16.msra.mxu0 %v3582_v52  ;;  %v4079_v52 = vld [vmem:[%s3877_s8 + $0x58] sm:$0xf]  ;;  %v981_v3 = vor.u32 %v980_v43, %v976_v42  ;;  %v1026_v43 = vshrl.u32 %v4099_v10, 16  ;;  %v1024_v25 = vrot.slane %v1022_v53, 5  ;;  %v4179_v53 = vld [vmem:[%s3877_s8 + $0x6c] sm:$0xf] }
  0x3e   : > { %3201 = vmatprep.subr.bf16.mxu0 %v3584_v17  ;;  %v963_v61 = vsel %vm3913_vm5, %v958_v39, %v962_v28  ;;  %v4092_v7 = vcombine.low %v4074_v46, %v4079_v52  ;;  %v1002_v20 = vshrl.u32 %v4079_v52, 16  ;;  %v998_v28 = vshll.u32 %v4079_v52, 16 }
  0x3f   : > { %3074 = vmatpush3.bf16.msra.mxu1 %v3583_v59  ;;  %v4101_v12 = vcombine.low %v953_v49, %v963_v61  ;;  %v972_v59 = vrot.slane %v971_v50, 4  ;;  %v982_v22 = vrot.slane %v981_v3, 4  ;;  %v3593_v49 = vld [vmem:[%s4610_s1 + $0x30] sm:$0xff]   ;;  %v1015_v50 = vrot.slane %v1013_v32, 4 }
  0x40   : > { %3075 = vmatprep.subr.bf16.mxu1 %v3587_v35  ;;  %v1004_v31 = vrot.slane %v1002_v20, 4  ;;  %v1000_v36 = vrot.slane %v998_v28, 5  ;;  %v1032_v61 = vshll.u32 %v4115_v33, 16  ;;  %v3594_v3 = vld [vmem:[%s4610_s1 + $0x1f0] sm:$0xff]   ;;  %v4138_v20 = vld [vmem:[%s3877_s8] sm:$0xf] }
  0x41   : > { %3202 = vmatpush3.bf16.msra.mxu0 %v3584_v17  ;;  %3187 = vmatprep.mubr.bf16.mxu0 %v4101_v12  ;;  %v977_v30 = vsel %vm3913_vm5, %v972_v59, %v976_v42  ;;  %v987_v17 = vsel %vm3913_vm5, %v982_v22, %v986_v51  ;;  %v1016_v42 = vshll.u32 %v4096_v9, 16  ;;  %v4143_v28 = vld [vmem:[%s3877_s8 + $0x4] sm:$0xf] }
  0x42   : > { %3060 = vmatmul.mubr.bf16.gmra.mrb[8].mxu1 %v4068_v41  ;;  %3203 = vmatprep.subr.bf16.mxu0 %v3588_v44  ;;  %v4119_v39 = vcombine.low %v977_v30, %v987_v17  ;;  %v1005_v51 = vor.u32 %v1004_v31, %v1000_v36  ;;  %v3595_v30 = vld [vmem:[%s4610_s1 + $0x38] sm:$0xff]   ;;  %v2650_v31 = vcombine.low %v4138_v20, %v4143_v28  ;;  %v1034_v17 = vrot.slane %v1032_v61, 5  ;;  %v3601_v61 = vld [vmem:[%s4610_s1 + $0x88] sm:$0xff]  }
  0x43   : > { %3076 = vmatpush3.bf16.msra.mxu1 %v3587_v35  ;;  %3063 = vmatprep.mubr.bf16.mxu1 %v4092_v7  ;;  %v996_v35 = vrot.slane %v995_v34, 4  ;;  %v1018_v59 = vrot.slane %v1016_v42, 5  ;;  %v3596_v42 = vld [vmem:[%s4610_s1 + $0x1f8] sm:$0xff]  }
  0x44   : > { %3077 = vmatprep.subr.bf16.mxu1 %v3589_v6  ;;  %3188 = vmatmul.mubr.bf16.gmra.mrb[8].mxu0 %v4119_v39  ;;  %v1006_v22 = vrot.slane %v1005_v51, 4  ;;  %v3600_v51 = vld [vmem:[%s4610_s1 + $0x188] sm:$0xff]  }
  0x45   : > { %3204 = vmatpush3.bf16.msra.mxu0 %v3588_v44  ;;  %v1028_v44 = vrot.slane %v1026_v43, 4  ;;  %v1001_v21 = vsel %vm3913_vm5, %v996_v35, %v1000_v36  ;;  %v1019_v29 = vor.u32 %v1018_v59, %v1015_v50  ;;  %v3599_v50 = vld [vmem:[%s4610_s1 + $0x80] sm:$0xff]   ;;  %v4614_v59 = vrot.slane %v4143_v28, 5 }
  0x46   : > { %3205 = vmatprep.subr.bf16.mxu0 %v3590_v13 }
  0x47   : > { %3078 = vmatpush3.bf16.msra.mxu1 %v3589_v6  ;;  %v1011_v6 = vsel %vm3913_vm5, %v1006_v22, %v1010_v38  ;;  %v1029_v32 = vor.u32 %v1028_v44, %v1024_v25  ;;  %v1020_v36 = vrot.slane %v1019_v29, 4  ;;  %v4189_v44 = vld [vmem:[%s3877_s8 + $0x70] sm:$0xf]  ;;  %v2768_v22 = vrot.slane %v3891_v19, 9 }
  0x48   : > { %3079 = vmatprep.subr.bf16.mxu1 %v3593_v49  ;;  %v4152_v34 = vcombine.low %v1001_v21, %v1011_v6  ;;  %v1037_v21 = vshrl.u32 %v4179_v53, 16  ;;  %v3603_v29 = vld [vmem:[%s4610_s1 + $0x90] sm:$0xff]   ;;  %v1663_v19 = vrot.slane %v3895_v26, 5  ;;  %v2769_v6 = vrot.slane %v3943_v62, 9 }
  0x49   : > { %3206 = vmatpush3.bf16.msra.mxu0 %v3590_v13  ;;  %v1030_v43 = vrot.slane %v1029_v32, 4  ;;  %v3598_v13 = vld [vmem:[%s4610_s1 + $0x180] sm:$0xff]   ;;  %v1025_v38 = vsel %vm3913_vm5, %v1020_v36, %v1024_v25  ;;  %v1040_v25 = vshll.u32 %v4179_v53, 16  ;;  %v1050_v32 = vshrl.u32 %v4189_v44, 16 }
  0x4a   : > { %3064 = vmatmul.mubr.bf16.gmra.mrb[12].mxu1 %v4135_v8  ;;  %3207 = vmatprep.subr.bf16.mxu0 %v3594_v3  ;;  %v3606_v36 = vld [vmem:[%s4610_s1 + $0x1a0] sm:$0xff]  }
  0x4b   : > { %3080 = vmatpush3.bf16.msra.mxu1 %v3593_v49  ;;  %3083 = vmatprep.mubr.bf16.mxu1 %v2650_v31  ;;  %v1035_v35 = vsel %vm3913_vm5, %v1030_v43, %v1034_v17  ;;  %v1046_v31 = vshll.u32 %v4189_v44, 16  ;;  %v4211_v17 = vrot.slane %v4614_v59, 4  ;;  %v1664_v43 = vsel %vm3899_vm4, %v2768_v22, %v1663_v19  ;;  %v4232_v22 = vld [vmem:[%s3877_s8 + $0x8] sm:$0x1] }
  0x4c   : > { %3191 = vmatprep.mubr.bf16.mxu0 %v4152_v34  ;;  %3081 = vmatprep.subr.bf16.mxu1 %v3595_v30  ;;  %v4169_v49 = vcombine.low %v1025_v38, %v1035_v35  ;;  %v1665_v38 = vrot.slane %v1663_v19, 4  ;;  %v1670_v19 = vrot.slane %v3946_v63, 5  ;;  %v3607_v63 = vld [vmem:[%s4610_s1 + $0xa0] sm:$0xff]  }
  0x4d   : > { %3208 = vmatpush3.bf16.msra.mxu0 %v3594_v3  ;;  %v3602_v3 = vld [vmem:[%s4610_s1 + $0x190] sm:$0xff]   ;;  %v4224_v35 = vrot.slane %v1046_v31, 5  ;;  %v1673_v31 = vrot.slane %v3956_v4, 5 }
  0x4e   : > { %3209 = vmatprep.subr.bf16.mxu0 %v3596_v42  ;;  %3192 = vmatmul.mubr.bf16.gmra.mrb[12].mxu0 %v4169_v49  ;;  %v1672_v59 = vrot.slane %v1670_v19, 4 }
  0x4f   : > { %3082 = vmatpush3.bf16.msra.mxu1 %v3595_v30  ;;  %3211 = vmatprep.mubr.bf16.mxu0 %v3983_v18  ;;  %v3604_v30 = vld [vmem:[%s4610_s1 + $0x198] sm:$0xff]  }
  0x50   : > { %3099 = vmatprep.subr.bf16.mxu1 %v3598_v13 }
  0x51   : > { %3210 = vmatpush3.bf16.msra.mxu0 %v3596_v42  ;;  %v1039_v42 = vrot.slane %v1037_v21, 4  ;;  %v1052_v21 = vrot.slane %v1050_v32, 4  ;;  %v1671_v32 = vsel %vm3899_vm4, %v2769_v6, %v1670_v19  ;;  %v1674_v6 = vsel %vm3899_vm4, %v1672_v59, %v1673_v31 }
  0x52   : > { %3084 = vmatmul.mubr.bf16.vlgmr.msra.gmra.mrb[0].mxu1 %v3888_v15  ;;  %3227 = vmatprep.subr.bf16.mxu0 %v3599_v50  ;;  %v4192_v15 = vld [vmem:[%s3877_s8 + $0x74] sm:$0x1]  ;;  %s212_s8 = sand.u32 1, %s3717_s16  }
  0x53   : > { %3100 = vmatpush3.bf16.msra.mxu1 %v3598_v13  ;;  %3087 = vmatprep.mubr.bf16.mxu1 %v3952_v1  ;;  %v1056_v26 = vshll.u32 %v4192_v15, 16  ;;  %v1042_v13 = vrot.slane %v1040_v25, 5  ;;  %v1053_v4 = vor.u32 %v1052_v21, %v4224_v35  ;;  %s2615_s12 = sshll.u32 %s212_s8, 7  ;;  %s4557_s13 = scalar_lea.sflag [#allocation3], %s212_s8 }
  0x54   : > { %3101 = vmatprep.subr.bf16.mxu1 %v3600_v51  ;;  %s4527_s14 = scalar_lea.vmem [#allocation2], %s2615_s12  ;;  %s3653_s12 = scalar_lea.vmem %s3652_s11, 4096 }
  0x55   : > { %v1043_v62 = vor.u32 %v1042_v13, %v1039_v42  ;;  %v1680_v42 = vrot.slane %v3989_v24, 5  ;;  %v1684_v13 = vrot.slane %v4009_v48, 5  ;;  %v4264_v24 = vcombine.low %v1671_v32, %v1674_v6  ;;  %s2532_s5 = sshll.u32 %s4527_s14, 4  ;;  %s4550_s5 = int_to_ptr.vmem [resolvable:$true] %s2532_s5 }
  0x56   : > { %3212 = vmatmul.mubr.bf16.vlgmr.msra.gmra.mrb[0].mxu0 %v4026_v57  ;;  %v1691_v32 = vrot.slane %v4037_v2, 5  ;;  %s3647_s9 = scalar_lea.vmem %s4550_s5, 2048  ;;  %p3654_p2 = scmp.lt.s32.totalorder %s4550_s5, %s3652_s11 }
  0x57   : > { %3102 = vmatpush3.bf16.msra.mxu1 %v3600_v51  ;;  %3228 = vmatpush3.bf16.msra.mxu0 %v3599_v50  ;;  %v3605_v50 = vld [vmem:[%s4610_s1 + $0x98] sm:$0xff]   ;;  %v1666_v51 = vrot.slane %v3919_v40, 5  ;;  %v1044_v59 = vrot.slane %v1043_v62, 4  ;;  %v1694_v62 = vrot.slane %v4046_v16, 5  ;;  %p3648_p13 = scmp.ne.s32.totalorder %s4550_s5, %s3647_s9  ;;  %p3655_p4 = scmp.lt.s32.totalorder %s3653_s12, %s3647_s9 }
  0x58   : > { %3103 = vmatprep.subr.bf16.mxu1 %v3602_v3  ;;  %3215 = vmatprep.mubr.bf16.mxu0 %v4055_v23  ;;  %v1693_v16 = vrot.slane %v1691_v32, 4 }
  0x59   : > { %3229 = vmatprep.subr.bf16.mxu0 %v3601_v61  ;;  %v1667_v25 = vsel %vm3899_vm4, %v1665_v38, %v1666_v51  ;;  %p3649_p0 = pnand %p3648_p13, %p3822_p3  ;;  %p3656_p5 = por %p3655_p4, %p3654_p2 }
  0x5a   : > { %3088 = vmatmul.mubr.bf16.gmra.mrb[4].mxu1 %v3980_v14  ;;  %v4238_v40 = vcombine.low %v1664_v43, %v1667_v25  ;;  %v1677_v43 = vrot.slane %v3970_v11, 5  ;;  %v1652_v11 = vrot.slane %v4232_v22, 5  ;;  %v2772_v25 = vrot.slane %v4024_v55, 9  ;;  %v3612_v55 = vld [vmem:[%s4610_s1 + $0x1b8] sm:$0xff]  }
  0x5b   : > { %3104 = vmatpush3.bf16.msra.mxu1 %v3602_v3  ;;  %3091 = vmatprep.mubr.bf16.mxu1 %v4003_v45  ;;  %v3608_v3 = vld [vmem:[%s4610_s1 + $0x1a8] sm:$0xff]   ;;  %v1695_v6 = vsel %vm3899_vm4, %v1693_v16, %v1694_v62  ;;  %p3650_p1 = pneg %p3649_p0 }
  0x5c   : > { %3105 = vmatprep.subr.bf16.mxu1 %v3604_v30  ;;  %3230 = vmatpush3.bf16.msra.mxu0 %v3601_v61  ;;  %v4241_v61 = vrot.slane %v1056_v26, 5  ;;  %v2771_v26 = vrot.slane %v4006_v47, 9  ;;  %v1679_v51 = vrot.slane %v1677_v43, 4  ;;  %v3609_v47 = vld [vmem:[%s4610_s1 + $0xa8] sm:$0xff]   ;;  %v1692_v2 = vsel %vm3899_vm4, %v2772_v25, %v1691_v32 }
  0x5d   : > { %3231 = vmatprep.subr.bf16.mxu0 %v3603_v29  ;;  %v1705_v25 = vrot.slane %v4099_v10, 5  ;;  %v3617_v10 = vld [vmem:[%s4610_s1 + $0x148] sm:$0xff]   ;;  %p3657_p6 = pnand %p3656_p5, %p3650_p1 }
  0x5e   : > { %3216 = vmatmul.mubr.bf16.gmra.mrb[4].mxu0 %v4101_v12  ;;  %v1685_v48 = vsel %vm3899_vm4, %v2771_v26, %v1684_v13  ;;  %v1681_v21 = vsel %vm3899_vm4, %v1679_v51, %v1680_v42  ;;  %v4622_v42 = vrot.slane %v4138_v20, 9  ;;  %v4318_v26 = vcombine.low %v1692_v2, %v1695_v6  ;;  %v3614_v51 = vld [vmem:[%s4610_s1 + $0x40] sm:$0xff]  }
  0x5f   : > { %3106 = vmatpush3.bf16.msra.mxu1 %v3604_v30  ;;  %3219 = vmatprep.mubr.bf16.mxu0 %v4119_v39  ;;  %v2770_v30 = vrot.slane %v3959_v5, 9  ;;  %v1687_v5 = vrot.slane %v4021_v54, 5  ;;  %v1686_v54 = vrot.slane %v1684_v13, 4 }
  0x60   : > { %3107 = vmatprep.subr.bf16.mxu1 %v3606_v36  ;;  %3232 = vmatpush3.bf16.msra.mxu0 %v3603_v29  ;;  %v3610_v29 = vld [vmem:[%s4610_s1 + $0x1b0] sm:$0xff]  }
  0x61   : > { %3233 = vmatprep.subr.bf16.mxu0 %v3605_v50  ;;  %v1678_v38 = vsel %vm3899_vm4, %v2770_v30, %v1677_v43  ;;  %v1688_v31 = vsel %vm3899_vm4, %v1686_v54, %v1687_v5  ;;  %v1701_v43 = vrot.slane %v4083_v58, 5  ;;  %v821_v5 = vshrl.u32 %v4138_v20, 16  ;;  %v3615_v54 = vld [vmem:[%s4610_s1 + $0x140] sm:$0xff]  }
  0x62   : > { %3092 = vmatmul.mubr.bf16.gmra.mrb[8].mxu1 %v4033_v60  ;;  %v4276_v19 = vcombine.low %v1678_v38, %v1681_v21  ;;  %v4282_v30 = vcombine.low %v1685_v48, %v1688_v31  ;;  %v2774_v48 = vrot.slane %v4096_v9, 9  ;;  %v830_v21 = vshll.u32 %v4143_v28, 16  ;;  %v3618_v31 = vld [vmem:[%s4610_s1 + $0x50] sm:$0xff]  }
  0x63   : > { %3108 = vmatpush3.bf16.msra.mxu1 %v3606_v36  ;;  %3095 = vmatprep.mubr.bf16.mxu1 %v4068_v41  ;;  %v1054_v36 = vrot.slane %v1053_v4, 4  ;;  %v1698_v4 = vrot.slane %v4079_v52, 5  ;;  %v1708_v9 = vrot.slane %v4115_v33, 5 }
  0x64   : > { %3109 = vmatprep.subr.bf16.mxu1 %v3608_v3  ;;  %3234 = vmatpush3.bf16.msra.mxu0 %v3605_v50  ;;  %v2773_v50 = vrot.slane %v4074_v46, 9  ;;  %v1049_v46 = vsel %vm3913_vm5, %v1044_v59, %v4224_v35  ;;  %v834_v59 = vshrl.u32 %v4143_v28, 16  ;;  %v1706_v62 = vsel %vm3899_vm4, %v2774_v48, %v1705_v25 }
  0x65   : > { %3235 = vmatprep.subr.bf16.mxu0 %v3607_v63  ;;  %v1059_v52 = vsel %vm3913_vm5, %v1054_v36, %v4241_v61  ;;  %v1653_v61 = vsel %vm3899_vm4, %v4211_v17, %v1652_v11  ;;  %v824_v11 = vshll.u32 %v4138_v20, 16  ;;  %v3616_v20 = vld [vmem:[%s4610_s1 + $0x48] sm:$0xff]  }
  0x66   : > { %3220 = vmatmul.mubr.bf16.gmra.mrb[8].mxu0 %v4152_v34  ;;  %v1699_v58 = vsel %vm3899_vm4, %v2773_v50, %v1698_v4  ;;  %v2757_v38 = vcombine.low %v1049_v46, %v1059_v52  ;;  %v836_v32 = vrot.slane %v834_v59, 4  ;;  %v1707_v50 = vrot.slane %v1705_v25, 4  ;;  %v3619_v52 = vld [vmem:[%s4610_s1 + $0x150] sm:$0xff]  }
  0x67   : > { %3110 = vmatpush3.bf16.msra.mxu1 %v3608_v3  ;;  %3223 = vmatprep.mubr.bf16.mxu0 %v4169_v49  ;;  %v1700_v3 = vrot.slane %v1698_v4, 4  ;;  %v4621_v49 = vrot.slane %v4143_v28, 5  ;;  %v826_v36 = vrot.slane %v824_v11, 5  ;;  %v2775_v28 = vrot.slane %v4179_v53, 9  ;;  %v3620_v4 = vld [vmem:[%s4610_s1 + $0x58] sm:$0xff]  }
  0x68   : > { %3111 = vmatprep.subr.bf16.mxu1 %v3610_v29  ;;  %3236 = vmatpush3.bf16.msra.mxu0 %v3607_v63  ;;  %v3611_v63 = vld [vmem:[%s4610_s1 + $0xb0] sm:$0xff]   ;;  %v1709_v33 = vsel %vm3899_vm4, %v1707_v50, %v1708_v9 }
  0x69   : > { %3237 = vmatprep.subr.bf16.mxu0 %v3609_v47  ;;  %v1650_v35 = vsel %vm3899_vm4, %v4622_v42, %v4621_v49  ;;  %v1702_v13 = vsel %vm3899_vm4, %v1700_v3, %v1701_v43  ;;  %v832_v43 = vrot.slane %v830_v21, 5 }
  0x6a   : > { %3096 = vmatmul.mubr.bf16.gmra.mrb[12].mxu1 %v4092_v7  ;;  %v4326_v17 = vcombine.low %v1699_v58, %v1702_v13 }
  0x6b   : > { %3112 = vmatpush3.bf16.msra.mxu1 %v3610_v29  ;;  %3115 = vmatprep.mubr.bf16.mxu1 %v3952_v1  ;;  %v2792_v29 = vcombine.low %v1650_v35, %v1653_v61  ;;  %v3613_v1 = vld [vmem:[%s4610_s1 + $0xb8] sm:$0xff]   ;;  %v837_v3 = vor.u32 %v836_v32, %v832_v43  ;;  %v3627_v61 = vld [vmem:[%s4610_s1 + $0x70] sm:$0xff]  }
  0x6c   : > { %3113 = vmatprep.subr.bf16.mxu1 %v3612_v55  ;;  %3238 = vmatpush3.bf16.msra.mxu0 %v3609_v47  ;;  %v823_v47 = vrot.slane %v821_v5, 4 }
  0x6d   : > { %3239 = vmatprep.subr.bf16.mxu0 %v3611_v63  ;;  %v838_v42 = vrot.slane %v837_v3, 4 }
  0x6e   : > { %3224 = vmatmul.mubr.bf16.gmra.mrb[12].mxu0 %v2757_v38  ;;  %v827_v58 = vor.u32 %v826_v36, %v823_v47  ;;  %v3629_v38 = vld [vmem:[%s4610_s1 + $0x78] sm:$0xff]  }
  0x6f   : > { %3114 = vmatpush3.bf16.msra.mxu1 %v3612_v55  ;;  %3243 = vmatprep.mubr.bf16.mxu0 %v2792_v29  ;;  %v4361_v55 = vcombine.low %v1706_v62, %v1709_v33 }
  0x70   : > { %3131 = vmatprep.subr.bf16.mxu1 %v3614_v51  ;;  %3240 = vmatpush3.bf16.msra.mxu0 %v3611_v63  ;;  %v840_v63 = vshll.u32 %v4232_v22, 16  ;;  %v828_v49 = vrot.slane %v827_v58, 4  ;;  %v3623_v22 = vld [vmem:[%s4610_s1 + $0x160] sm:$0xff]  }
  0x71   : > { %3241 = vmatprep.subr.bf16.mxu0 %v3613_v1 }
  0x72   : > { %3116 = vmatmul.mubr.bf16.vlgmr.msra.gmra.mrb[0].mxu1 %v3980_v14  ;;  %v1712_v14 = vrot.slane %v4189_v44, 5  ;;  %v842_v35 = vrot.slane %v840_v63, 5  ;;  %v833_v6 = vsel %vm3913_vm5, %v828_v49, %v832_v43 }
  0x73   : > { %3132 = vmatpush3.bf16.msra.mxu1 %v3614_v51  ;;  %3119 = vmatprep.mubr.bf16.mxu1 %v4003_v45  ;;  %v1715_v45 = vrot.slane %v4192_v15, 5  ;;  %v3632_v51 = vld [vmem:[%s4610_s1 + $0x208] sm:$0xff]  }
  0x74   : > { %3133 = vmatprep.subr.bf16.mxu1 %v3616_v20  ;;  %3242 = vmatpush3.bf16.msra.mxu0 %v3613_v1  ;;  %v4365_v2 = vsel %vm3899_vm4, %v2775_v28, %v1712_v14  ;;  %v1714_v16 = vrot.slane %v1712_v14, 4  ;;  %v843_v13 = vsel %vm3913_vm5, %v838_v42, %v842_v35 }
  0x75   : > { %3259 = vmatprep.subr.bf16.mxu0 %v3615_v54  ;;  %v2700_v5 = vcombine.low %v833_v6, %v843_v13 }
  0x76   : > { %v4370_v15 = vsel %vm3899_vm4, %v1714_v16, %v1715_v45 }
  0x77   : > { %3134 = vmatpush3.bf16.msra.mxu1 %v3616_v20  ;;  %3244 = vmatmul.mubr.bf16.vlgmr.msra.gmra.mrb[0].mxu0 %v3935_v56  ;;  %v2849_v46 = vcombine.low %v4365_v2, %v4370_v15 }
  0x78   : > { %3135 = vmatprep.subr.bf16.mxu1 %v3618_v31  ;;  %3260 = vmatpush3.bf16.msra.mxu0 %v3615_v54 }
  0x79   : > { %3247 = vmatprep.mubr.bf16.mxu0 %v4238_v40  ;;  %3261 = vmatprep.subr.bf16.mxu0 %v3617_v10 }
  0x7a   : > { %3120 = vmatmul.mubr.bf16.gmra.mrb[4].mxu1 %v4033_v60  ;;  %v3621_v60 = vld [vmem:[%s4610_s1 + $0x158] sm:$0xff]  }
  0x7b   : > { %3136 = vmatpush3.bf16.msra.mxu1 %v3618_v31  ;;  %3123 = vmatprep.mubr.bf16.mxu1 %v4068_v41  ;;  %v3624_v41 = vld [vmem:[%s4610_s1 + $0x68] sm:$0xff]  }
  0x7c   : > { %3137 = vmatprep.subr.bf16.mxu1 %v3620_v4  ;;  %3262 = vmatpush3.bf16.msra.mxu0 %v3617_v10  ;;  %v4503_v10 = vld [vmem:[%s4611_s2] ss:$0 sm:$0xff] }
  0x7d   : > { %3263 = vmatprep.subr.bf16.mxu0 %v3619_v52 }
  0x7f   : > { %3138 = vmatpush3.bf16.msra.mxu1 %v3620_v4  ;;  %3248 = vmatmul.mubr.bf16.gmra.mrb[4].mxu0 %v4264_v24 }
  0x80   : > { %3139 = vmatprep.subr.bf16.mxu1 %v3622_v27  ;;  %3264 = vmatpush3.bf16.msra.mxu0 %v3619_v52 }
  0x81   : > { %3251 = vmatprep.mubr.bf16.mxu0 %v4276_v19  ;;  %3265 = vmatprep.subr.bf16.mxu0 %v3621_v60 }
  0x82   : > { %3124 = vmatmul.mubr.bf16.gmra.mrb[8].mxu1 %v4092_v7  ;;  %v3625_v7 = vld [vmem:[%s4610_s1 + $0x168] sm:$0xff]  }
  0x83   : > { %3140 = vmatpush3.bf16.msra.mxu1 %v3622_v27  ;;  %3127 = vmatprep.mubr.bf16.mxu1 %v4135_v8  ;;  %v2675_v8 = vcombine.low %v4179_v53, %v4189_v44  ;;  %v3630_v53 = vld [vmem:[%s4610_s1 + $0x178] sm:$0xff]   ;;  %v3631_v44 = vld [vmem:[%s4610_s1 + $0x200] sm:$0xff]  }
  0x84   : > { %3141 = vmatprep.subr.bf16.mxu1 %v3624_v41  ;;  %3266 = vmatpush3.bf16.msra.mxu0 %v3621_v60 }
  0x85   : > { %3267 = vmatprep.subr.bf16.mxu0 %v3623_v22 }
  0x87   : > { %3142 = vmatpush3.bf16.msra.mxu1 %v3624_v41  ;;  %3252 = vmatmul.mubr.bf16.gmra.mrb[8].mxu0 %v4282_v30 }
  0x88   : > { %3143 = vmatprep.subr.bf16.mxu1 %v3627_v61  ;;  %3268 = vmatpush3.bf16.msra.mxu0 %v3623_v22 }
  0x89   : > { %3255 = vmatprep.mubr.bf16.mxu0 %v4318_v26  ;;  %3269 = vmatprep.subr.bf16.mxu0 %v3625_v7 }
  0x8a   : > { %3128 = vmatmul.mubr.bf16.gmra.mrb[12].mxu1 %v2675_v8 }
  0x8b   : > { %3144 = vmatpush3.bf16.msra.mxu1 %v3627_v61  ;;  %3147 = vmatprep.mubr.bf16.mxu1 %v2700_v5 }
  0x8c   : > { %3145 = vmatprep.subr.bf16.mxu1 %v3629_v38  ;;  %3270 = vmatpush3.bf16.msra.mxu0 %v3625_v7 }
  0x8d   : > { %3271 = vmatprep.subr.bf16.mxu0 %v3628_v37 }
  0x8f   : > { %3146 = vmatpush3.bf16.msra.mxu1 %v3629_v38  ;;  %3256 = vmatmul.mubr.bf16.gmra.mrb[12].mxu0 %v4326_v17 }
  0x90   : > { %3272 = vmatpush3.bf16.msra.mxu0 %v3628_v37  ;;  %3275 = vmatprep.mubr.bf16.mxu0 %v3935_v56  ;;  %v3633_v56 = vld [vmem:[%s4610_s1 + $0x210] sm:$0xff]  }
  0x91   : > { %3273 = vmatprep.subr.bf16.mxu0 %v3630_v53 }
  0x92   : > { %3148 = vmatmul.mubr.bf16.vlgmr.msra.gmra.mrb[0].mxu1 %v3948_v0  ;;  %v3634_v0 = vld [vmem:[%s4610_s1 + $0x218] sm:$0xff]  }
  0x93   : > { %3151 = vmatprep.mubr.bf16.mxu1 %v3983_v18  ;;  %v3635_v18 = vld [vmem:[%s4610_s1 + $0x220] sm:$0xff]  }
  0x94   : > { %3274 = vmatpush3.bf16.msra.mxu0 %v3630_v53 }
  0x95   : > { %3291 = vmatprep.subr.bf16.mxu0 %v3631_v44 }
  0x97   : > { %3276 = vmatmul.mubr.bf16.vlgmr.msra.gmra.mrb[0].mxu0 %v4238_v40 }
  0x98   : > { %3292 = vmatpush3.bf16.msra.mxu0 %v3631_v44  ;;  %3279 = vmatprep.mubr.bf16.mxu0 %v4264_v24 }
  0x99   : > { %3293 = vmatprep.subr.bf16.mxu0 %v3632_v51 }
  0x9a   : > { %3152 = vmatmul.mubr.bf16.gmra.mrb[4].mxu1 %v4026_v57  ;;  %v3636_v57 = vld [vmem:[%s4610_s1 + $0x228] sm:$0xff]  }
  0x9b   : > { %3155 = vmatprep.mubr.bf16.mxu1 %v4055_v23  ;;  %v3637_v23 = vld [vmem:[%s4610_s1 + $0x230] sm:$0xff]  }
  0x9c   : > { %3294 = vmatpush3.bf16.msra.mxu0 %v3632_v51 }
  0x9d   : > { %3295 = vmatprep.subr.bf16.mxu0 %v3633_v56 }
  0x9f   : > { %3280 = vmatmul.mubr.bf16.gmra.mrb[4].mxu0 %v4276_v19 }
  0xa0   : > { %3296 = vmatpush3.bf16.msra.mxu0 %v3633_v56  ;;  %3283 = vmatprep.mubr.bf16.mxu0 %v4282_v30 }
  0xa1   : > { %3297 = vmatprep.subr.bf16.mxu0 %v3634_v0 }
  0xa2   : > { %3156 = vmatmul.mubr.bf16.gmra.mrb[8].mxu1 %v4101_v12  ;;  %v3638_v12 = vld [vmem:[%s4610_s1 + $0x238] sm:$0xff]  }
  0xa3   : > { %3159 = vmatprep.mubr.bf16.mxu1 %v4119_v39  ;;  %v3639_v39 = vld [vmem:[%s4612_s3] sm:$0xff]  }
  0xa4   : > { %3298 = vmatpush3.bf16.msra.mxu0 %v3634_v0  ;;  %3323 = vmatprep.subr.bf16.mxu1 %v3639_v39 }
  0xa5   : > { %3299 = vmatprep.subr.bf16.mxu0 %v3635_v18  ;;  %3324 = vmatpush3.bf16.msra.mxu1 %v3639_v39 }
  0xa7   : > { %3284 = vmatmul.mubr.bf16.gmra.mrb[8].mxu0 %v4318_v26 }
  0xa8   : > { %3300 = vmatpush3.bf16.msra.mxu0 %v3635_v18  ;;  %3287 = vmatprep.mubr.bf16.mxu0 %v4326_v17 }
  0xa9   : > { %3301 = vmatprep.subr.bf16.mxu0 %v3636_v57 }
  0xaa   : > { %3160 = vmatmul.mubr.bf16.gmra.mrb[12].mxu1 %v4152_v34  ;;  %v3640_v34 = vld [vmem:[%s4612_s3 + $0x8] sm:$0xff]  }
  0xab   : > { %3325 = vmatprep.subr.bf16.mxu1 %v3640_v34 }
  0xac   : > { %3302 = vmatpush3.bf16.msra.mxu0 %v3636_v57  ;;  %3326 = vmatpush3.bf16.msra.mxu1 %v3640_v34 }
  0xad   : > { %3303 = vmatprep.subr.bf16.mxu0 %v3637_v23 }
  0xaf   : > { %3288 = vmatmul.mubr.bf16.gmra.mrb[12].mxu0 %v4361_v55 }
  0xb0   : > { %3304 = vmatpush3.bf16.msra.mxu0 %v3637_v23  ;;  %3307 = vmatprep.mubr.bf16.mxu0 %v4238_v40  ;;  %v3641_v40 = vld [vmem:[%s4612_s3 + $0x10] sm:$0xff]  }
  0xb1   : > { %3305 = vmatprep.subr.bf16.mxu0 %v3638_v12  ;;  %3327 = vmatprep.subr.bf16.mxu1 %v3641_v40 }
  0xb2   : > { %3328 = vmatpush3.bf16.msra.mxu1 %v3641_v40 }
  0xb4   : > { %3306 = vmatpush3.bf16.msra.mxu0 %v3638_v12 }
  0xb7   : > { %3308 = vmatmul.mubr.bf16.vlgmr.msra.gmra.mrb[0].mxu0 %v4264_v24  ;;  %v3642_v24 = vld [vmem:[%s4612_s3 + $0x18] sm:$0xff]  }
  0xb8   : > { %3311 = vmatprep.mubr.bf16.mxu0 %v4276_v19  ;;  %3329 = vmatprep.subr.bf16.mxu1 %v3642_v24  ;;  %v3643_v19 = vld [vmem:[%s4612_s3 + $0x20] sm:$0xff]  }
  0xb9   : > { %3330 = vmatpush3.bf16.msra.mxu1 %v3642_v24 }
  0xba   : > { %3331 = vmatprep.subr.bf16.mxu1 %v3643_v19 }
  0xbd   : > { %3332 = vmatpush3.bf16.msra.mxu1 %v3643_v19 }
  0xbf   : > { %3312 = vmatmul.mubr.bf16.gmra.mrb[4].mxu0 %v4282_v30  ;;  %v3644_v30 = vld [vmem:[%s4612_s3 + $0x28] sm:$0xff]  }
  0xc0   : > { %3315 = vmatprep.mubr.bf16.mxu0 %v4318_v26  ;;  %3333 = vmatprep.subr.bf16.mxu1 %v3644_v30  ;;  %v3645_v26 = vld [vmem:[%s4612_s3 + $0x30] sm:$0xff]  }
  0xc1   : > { %3334 = vmatpush3.bf16.msra.mxu1 %v3644_v30 }
  0xc2   : > { %3335 = vmatprep.subr.bf16.mxu1 %v3645_v26 }
  0xc5   : > { %3336 = vmatpush3.bf16.msra.mxu1 %v3645_v26 }
  0xc7   : > { %3316 = vmatmul.mubr.bf16.gmra.mrb[8].mxu0 %v4326_v17  ;;  %v3646_v17 = vld [vmem:[%s4612_s3 + $0x38] sm:$0xff]  }
  0xc8   : > { %3319 = vmatprep.mubr.bf16.mxu0 %v4361_v55  ;;  %3337 = vmatprep.subr.bf16.mxu1 %v3646_v17 }
  0xc9   : > { %3338 = vmatpush3.bf16.msra.mxu1 %v3646_v17 }
  0xcf   : > { %3320 = vmatmul.mubr.bf16.gmra.mrb[12].mxu0 %v2849_v46 }
 0x165   : > { %v3149_v11 = vpop.f32.mrb[0].mxu1 }
 0x166   : > { %v1191_v29 = vpop.f32.mrb[1].mxu1 }
 0x167   : > { %v3150_v1 = vpop.f32.mrb[2].mxu1 }
 0x168   : > { %v1194_v59 = vpop.f32.mrb[3].mxu1 }
 0x16d   : > { %v3153_v48 = vpop.f32.mrb[4].mxu1 }
 0x16e   : > { %v1207_v54 = vpop.f32.mrb[5].mxu1 }
 0x16f   : > { %v3154_v20 = vpop.f32.mrb[6].mxu1 }
 0x170   : > { %v1210_v47 = vpop.f32.mrb[7].mxu1 }
 0x175   : > { %v3157_v36 = vpop.f32.mrb[8].mxu1 }
 0x176   : > { %v1223_v21 = vpop.f32.mrb[9].mxu1 }
 0x177   : > { %v3158_v25 = vpop.f32.mrb[10].mxu1 }
 0x178   : > { %v1226_v9 = vpop.f32.mrb[11].mxu1 }
 0x17d   : > { %v3161_v31 = vpop.f32.mrb[12].mxu1 }
 0x17e   : > { %v4494_v32 = vpop.f32.mrb[13].mxu1 }
 0x17f   : > { %v4496_v62 = vpop.f32.mrb[14].mxu1 }
 0x180   : > { %v4498_v50 = vpop.f32.mrb[15].mxu1 }
 0x18a   : > { %v3309_v28 = vpop.f32.mrb[0].mxu0 }
 0x18b   : > { %v3355_v14 = vadd.f32 %v3309_v28, %v3149_v11  ;;  %v2212_v45 = vpop.f32.mrb[1].mxu0 }
 0x18c   : > { %v3356_v33 = vadd.f32 %v2212_v45, %v1191_v29  ;;  %v3310_v4 = vpop.f32.mrb[2].mxu0 }
 0x18d   : > { %v2300_v43 = vadd.f32 %v3355_v14, %v4503_v10  ;;  %v3357_v55 = vadd.f32 %v3310_v4, %v3150_v1  ;;  %v2215_v2 = vpop.f32.mrb[3].mxu0 }
 0x18e   : > { %v2298_v16 = vadd.f32 %v3356_v33, %v4503_v10  ;;  %v3358_v15 = vadd.f32 %v2215_v2, %v1194_v59 }
 0x18f   : > { %v2301_v46 = vadd.f32 %v3357_v55, %v4503_v10  ;;  %v2316_v27 = vmax.f32 %v2300_v43, 0.0 }
 0x190   : > { %v2299_v52 = vadd.f32 %v3358_v15, %v4503_v10  ;;  %v2314_v3 = vmax.f32 %v2298_v16, 0.0 }
 0x191   : > { %v2317_v58 = vmax.f32 %v2301_v46, 0.0 }
 0x192   : > { %v2315_v63 = vmax.f32 %v2299_v52, 0.0  ;;  %v3313_v60 = vpop.f32.mrb[4].mxu0 }
 0x193   : > { %v2331_v41 = vpack.c.bf16 %v2317_v58, %v2316_v27  ;;  %v3359_v49 = vadd.f32 %v3313_v60, %v3153_v48  ;;  %v2228_v42 = vpop.f32.mrb[5].mxu0 }
 0x194   : > { %v3360_v35 = vadd.f32 %v2228_v42, %v1207_v54  ;;  %v3314_v22 = vpop.f32.mrb[6].mxu0  ;;  %v2330_v61 = vpack.c.bf16 %v2315_v63, %v2314_v3 }
 0x195   : > { %v2304_v6 = vadd.f32 %v3359_v49, %v4503_v10  ;;  %v3361_v13 = vadd.f32 %v3314_v22, %v3154_v20  ;;  %v2231_v7 = vpop.f32.mrb[7].mxu0 }
 0x196   : > { %v2302_v8 = vadd.f32 %v3360_v35, %v4503_v10  ;;  %v3362_v5 = vadd.f32 %v2231_v7, %v1210_v47  ;;  %3339 = vmatprep.mubr.bf16.mxu1 %v2330_v61 }
 0x197   : > { %v2305_v38 = vadd.f32 %v3361_v13, %v4503_v10  ;;  %3340 = vmatmul.mubr.bf16.vlgmr.msra.gmra.mrb[16].mxu1 %v2331_v41  ;;  %v2320_v53 = vmax.f32 %v2304_v6, 0.0 }
 0x198   : > { %v2303_v37 = vadd.f32 %v3362_v5, %v4503_v10  ;;  %v2318_v51 = vmax.f32 %v2302_v8, 0.0 }
 0x199   : > { %v2321_v44 = vmax.f32 %v2305_v38, 0.0 }
 0x19a   : > { %v2319_v56 = vmax.f32 %v2303_v37, 0.0  ;;  %v3317_v0 = vpop.f32.mrb[8].mxu0 }
 0x19b   : > { %v3363_v18 = vadd.f32 %v3317_v0, %v3157_v36  ;;  %v2244_v57 = vpop.f32.mrb[9].mxu0  ;;  %v2333_v23 = vpack.c.bf16 %v2321_v44, %v2320_v53 }
 0x19c   : > { %v3364_v12 = vadd.f32 %v2244_v57, %v1223_v21  ;;  %v3318_v39 = vpop.f32.mrb[10].mxu0  ;;  %v2332_v34 = vpack.c.bf16 %v2319_v56, %v2318_v51 }
 0x19d   : > { %v2308_v40 = vadd.f32 %v3363_v18, %v4503_v10  ;;  %v3365_v24 = vadd.f32 %v3318_v39, %v3158_v25  ;;  %v2247_v19 = vpop.f32.mrb[11].mxu0 }
 0x19e   : > { %v2306_v30 = vadd.f32 %v3364_v12, %v4503_v10  ;;  %v3366_v26 = vadd.f32 %v2247_v19, %v1226_v9  ;;  %3343 = vmatprep.mubr.bf16.mxu1 %v2332_v34 }
 0x19f   : > { %v2309_v17 = vadd.f32 %v3365_v24, %v4503_v10  ;;  %3344 = vmatmul.mubr.bf16.gmra.mrb[20].mxu1 %v2333_v23  ;;  %v2324_v29 = vmax.f32 %v2308_v40, 0.0 }
 0x1a0   : > { %v2307_v11 = vadd.f32 %v3366_v26, %v4503_v10  ;;  %v2322_v59 = vmax.f32 %v2306_v30, 0.0 }
 0x1a1   : > { %v2325_v1 = vmax.f32 %v2309_v17, 0.0 }
 0x1a2   : > { %v2323_v48 = vmax.f32 %v2307_v11, 0.0  ;;  %v3321_v54 = vpop.f32.mrb[12].mxu0 }
 0x1a3   : > { %v3367_v20 = vadd.f32 %v3321_v54, %v3161_v31  ;;  %v2260_v47 = vpop.f32.mrb[13].mxu0  ;;  %v2335_v36 = vpack.c.bf16 %v2325_v1, %v2324_v29 }
 0x1a4   : > { %v3368_v21 = vadd.f32 %v2260_v47, %v4494_v32  ;;  %v3322_v25 = vpop.f32.mrb[14].mxu0  ;;  %v2334_v28 = vpack.c.bf16 %v2323_v48, %v2322_v59 }
 0x1a5   : > { %v2312_v9 = vadd.f32 %v3367_v20, %v4503_v10  ;;  %v3369_v14 = vadd.f32 %v3322_v25, %v4496_v62  ;;  %v2263_v45 = vpop.f32.mrb[15].mxu0 }
 0x1a6   : > { %v2310_v33 = vadd.f32 %v3368_v21, %v4503_v10  ;;  %v3370_v4 = vadd.f32 %v2263_v45, %v4498_v50  ;;  %3347 = vmatprep.mubr.bf16.mxu1 %v2334_v28 }
 0x1a7   : > { %v2313_v31 = vadd.f32 %v3369_v14, %v4503_v10  ;;  %3348 = vmatmul.mubr.bf16.gmra.mrb[24].mxu1 %v2335_v36  ;;  %v2328_v32 = vmax.f32 %v2312_v9, 0.0 }
 0x1a8   : > { %v2311_v43 = vadd.f32 %v3370_v4, %v4503_v10  ;;  %v2326_v2 = vmax.f32 %v2310_v33, 0.0 }
 0x1a9   : > { %v2329_v55 = vmax.f32 %v2313_v31, 0.0 }
 0x1aa   : > { %v2327_v16 = vmax.f32 %v2311_v43, 0.0 }
 0x1ab   : > { %v2337_v15 = vpack.c.bf16 %v2329_v55, %v2328_v32 }
 0x1ac   : > { %v2336_v46 = vpack.c.bf16 %v2327_v16, %v2326_v2 }
 0x1ae   : > { %3351 = vmatprep.mubr.bf16.mxu1 %v2336_v46 }
 0x1af   : > { %3352 = vmatmul.mubr.bf16.gmra.mrb[28].mxu1 %v2337_v15 }
 0x26a   : > { %v3341_v62 = vpop.f32.mrb[16].mxu1 }
 0x26b   : > { %2501 = vst [vmem:[%s4527_s14 + $0x10] sm:$0xff] %v3341_v62  ;;  %v2436_v50 = vpop.f32.mrb[17].mxu1 }
 0x26c   : > { %2499 = vst [vmem:[%s4527_s14] sm:$0xff] %v2436_v50  ;;  %v3342_v10 = vpop.f32.mrb[18].mxu1 }
 0x26d   : > { %2502 = vst [vmem:[%s4527_s14 + $0x18] sm:$0xff] %v3342_v10  ;;  %v2439_v52 = vpop.f32.mrb[19].mxu1 }
 0x26e   : > { %2500 = vst [vmem:[%s4527_s14 + $0x8] sm:$0xff] %v2439_v52 }
 0x272   : > { %v3345_v27 = vpop.f32.mrb[20].mxu1 }
 0x273   : > { %2505 = vst [vmem:[%s4527_s14 + $0x30] sm:$0xff] %v3345_v27  ;;  %v2452_v58 = vpop.f32.mrb[21].mxu1 }
 0x274   : > { %2503 = vst [vmem:[%s4527_s14 + $0x20] sm:$0xff] %v2452_v58  ;;  %v3346_v3 = vpop.f32.mrb[22].mxu1 }
 0x275   : > { %2506 = vst [vmem:[%s4527_s14 + $0x38] sm:$0xff] %v3346_v3  ;;  %v2455_v63 = vpop.f32.mrb[23].mxu1 }
 0x276   : > { %2504 = vst [vmem:[%s4527_s14 + $0x28] sm:$0xff] %v2455_v63 }
 0x27a   : > { %v3349_v60 = vpop.f32.mrb[24].mxu1 }
 0x27b   : > { %2509 = vst [vmem:[%s4527_s14 + $0x50] sm:$0xff] %v3349_v60  ;;  %v2468_v41 = vpop.f32.mrb[25].mxu1 }
 0x27c   : > { %2507 = vst [vmem:[%s4527_s14 + $0x40] sm:$0xff] %v2468_v41  ;;  %v3350_v49 = vpop.f32.mrb[26].mxu1 }
 0x27d   : > { %2510 = vst [vmem:[%s4527_s14 + $0x58] sm:$0xff] %v3350_v49  ;;  %v2471_v42 = vpop.f32.mrb[27].mxu1 }
 0x27e   : > { %2508 = vst [vmem:[%s4527_s14 + $0x48] sm:$0xff] %v2471_v42 }
 0x282   : > { %v3353_v35 = vpop.f32.mrb[28].mxu1 }
 0x283   : > { %2513 = vst [vmem:[%s4527_s14 + $0x70] sm:$0xff] %v3353_v35  ;;  %v2484_v22 = vpop.f32.mrb[29].mxu1 }
 0x284   : > { %2511 = vst [vmem:[%s4527_s14 + $0x60] sm:$0xff] %v2484_v22  ;;  %v3354_v61 = vpop.f32.mrb[30].mxu1 }
 0x285   : > { %2514 = vst [vmem:[%s4527_s14 + $0x78] sm:$0xff] %v3354_v61  ;;  %v2487_v6 = vpop.f32.mrb[31].mxu1 }
 0x286   : > { %2512 = vst [vmem:[%s4527_s14 + $0x68] sm:$0xff] %v2487_v6 }
 0x287   : > { %3660 = shalt.err (!%p3657_p6)
}
 0x288   : > { %s3661_s8 = scalar_lea.hbm %s4548_s6, 2048  ;;  %s3665_s24 = scalar_lea.hbm %s4613_s4, 8192 }
 0x289   : > { %p3662_p7 = scmp.ne.s32.totalorder %s4548_s6, %s3661_s8  ;;  %p3666_p11 = scmp.lt.u32.totalorder %s4548_s6, %s4613_s4 }
 0x28a   : > { %p3667_p12 = scmp.lt.u32.totalorder %s3665_s24, %s3661_s8  ;;  %p3669_p0 = scmp.lt.u32.totalorder %s3661_s8, %s4548_s6 }
 0x28b   : > { %p3663_p9 = pnand %p3662_p7, %p3822_p3 }
 0x28c   : > { %p3668_p13 = por %p3667_p12, %p3666_p11 }
 0x28d   : > { %p3664_p10 = pneg %p3663_p9 }
 0x28e   : > { %p3670_p1 = por %p3669_p0, %p3668_p13 }
 0x290   : > { %p3671_p2 = pnand %p3670_p1, %p3664_p10 }
 0x292   : > { %3674 = shalt.err (!%p3671_p2)
}
 0x293   : > { %s3744_s18 = smov 128   ;;  %s3745_s19 = smov 8  }
 0x294   : > { %3484 = dma.vmem_to_hbm [thread:$0]  (%p3822_p3), %s4550_s5, 2048, %s4548_s6, %s4557_s13, %s3744_s18, %s3744_s18, %s3745_s19  }
 0x295 PF: > { %p3490_p4 = scmp.ge.s32.totalorder %s3741_s22, 2  ;;  %s2547_s9 = sand.u32 1, %s3713_s15  }
 0x296   : > { %s2548_s10 = scalar_lea.sflag [#allocation3], %s2547_s9 }
 0x297   : > { %p3487_p5 = pnand %p3490_p4, %p3831_p8 }
 0x299   : > { %3708 = dma.done.wait (!%p3487_p5), %s2548_s10, 2048  }
 0x29a   : > { %3710 = vsyncadd (!%p3487_p5), %s2548_s10, 4294965248  ;;  %s17_s22 = sadd.s32 1, %s3741_s22   ;;  %s4623_s15 = smov %s3717_s16 }
 0x29b   : > { %p14_p6 = scmp.ge.s32.totalorder %s17_s22, 6   ;;  %s4624_s16 = smov %s3721_s17 }
 0x29c   : > { %s4625_s17 = smov %s3840_s7  ;;  %s4626_s18 = smov %s3733_s20 }
 0x29d   : > { %s4627_s19 = smov %s3737_s21  ;;  %s4628_s20 = smov %s4631_s25 }
 0x29e   : > { %s4629_s21 = smov %s4635_s26  ;;  %16 = sbr.rel (!%p14_p6) target bundleno = 5 (0x5), region = 79 }
 0x2a5   :  { %2553 = vsyncpa [#allocation3], 1 }
 0x2a6   :  { %2555 = vsyncpa [#allocation3 + $0x1], 1 }

</bundles_post_ra>
